<compile_context>
chip_gen: v7x
topology: tpu7x:2x2x1
jax: 0.10.0
libtpu: 0.0.40
codegen_flags: <defaults>
</compile_context>

<pallas_src>
import functools
import math

import jax
import jax.numpy as jnp
from jax.experimental import pallas as pl
from jax.experimental.pallas import tpu as pltpu
from jax.scipy.linalg import block_diag

NEG_SLOPE = 0.01   # nn.LeakyReLU default
BN_EPS = 1e-5      # nn.BatchNorm1d default

# MXU operand dtype.  Set to jnp.bfloat16 for large-batch training on v6e/v7x
# (accumulation stays f32 via preferred_element_type; biases / softmax stay
# f32).  Kept f32 here so the 1e-4 reference check below passes as-is.
MXU_DTYPE = jnp.float32


def _leaky_relu(x):
    return jnp.where(x > 0, x, NEG_SLOPE * x)


def _mxu(x):
    return x if x.dtype == MXU_DTYPE else x.astype(MXU_DTYPE)


def attention_critic_kernel(sa_ref,
                            enc_w_ref, enc_b_ref, senc_w_ref, senc_b_ref,
                            key_w_ref, sel_w_ref, val_w_ref, val_b_ref,
                            c1a_w_ref, c1b_w_ref, c1_b_ref, c2_w_ref, c2_b_ref,
                            out_ref, *, n_agents, sdim, adim, hidden_dim,
                            attend_heads):
    N, H, A, NH = n_agents, hidden_dim, adim, attend_heads
    D = H // NH
    idim = sdim + adim
    inv_sqrt_d = 1.0 / math.sqrt(D)

    # Raw (un-normalized) slab; BatchNorm is folded into the encoder weights.
    sa = sa_ref[...]                                   # (bt, N*idim)
    sa_m = _mxu(sa)

    # Per-agent encoders, block-diag packed over agents -> one wide matmul each.
    sa_enc = _leaky_relu(
        jnp.dot(sa_m, enc_w_ref[...], preferred_element_type=jnp.float32)
        + enc_b_ref[...])                              # (bt, N*H)
    s_enc = _leaky_relu(
        jnp.dot(sa_m, senc_w_ref[...], preferred_element_type=jnp.float32)
        + senc_b_ref[...])                             # (bt, N*H)

    # Shared key / selector / value extractors (weights replicated block-diag
    # per agent, heads packed on lanes): one matmul each.
    keys = jnp.dot(_mxu(sa_enc), key_w_ref[...],
                   preferred_element_type=jnp.float32)           # (bt, N*NH*D)
    sels = jnp.dot(_mxu(s_enc), sel_w_ref[...],
                   preferred_element_type=jnp.float32)           # (bt, N*NH*D)
    vals = _leaky_relu(
        jnp.dot(_mxu(sa_enc), val_w_ref[...],
                preferred_element_type=jnp.float32) + val_b_ref[...])

    # Scaled-dot soft attention of each agent over the OTHER agents; the N-1
    # logits per (agent, head) are packed so the softmax is one max/exp/sum,
    # with the divide on pl.reciprocal (EUP path).
    ov_cols = []
    for i in range(N):
        head_cols = []
        for h in range(NH):
            s_i = sels[:, i * NH * D + h * D: i * NH * D + h * D + D]   # (bt, D)
            others = [j for j in range(N) if j != i]
            logits = jnp.concatenate(
                [jnp.sum(s_i * keys[:, j * NH * D + h * D: j * NH * D + h * D + D],
                         axis=-1, keepdims=True)
                 for j in others], axis=-1) * inv_sqrt_d                # (bt, N-1)
            m = jnp.max(logits, axis=-1, keepdims=True)
            e = jnp.exp(logits - m)
            w = e * pl.reciprocal(jnp.sum(e, axis=-1, keepdims=True))   # (bt, N-1)
            ov = None
            for c, j in enumerate(others):
                v_j = vals[:, j * NH * D + h * D: j * NH * D + h * D + D]
                t = w[:, c:c + 1] * v_j
                ov = t if ov is None else ov + t
            head_cols.append(ov)                                        # (bt, D)
        ov_cols.append(head_cols[0] if NH == 1
                       else jnp.concatenate(head_cols, axis=-1))        # (bt, H)
    ov_slab = ov_cols[0] if N == 1 else jnp.concatenate(ov_cols, axis=-1)

    # Per-agent 2-layer critic head, block-diag packed.  fc1 weight is split so
    # no concat of (s_enc, other_values) is needed.
    h1 = _leaky_relu(
        jnp.dot(_mxu(s_enc), c1a_w_ref[...], preferred_element_type=jnp.float32)
        + jnp.dot(_mxu(ov_slab), c1b_w_ref[...], preferred_element_type=jnp.float32)
        + c1_b_ref[...])                                                # (bt, N*H)
    all_q = (jnp.dot(_mxu(h1), c2_w_ref[...], preferred_element_type=jnp.float32)
             + c2_b_ref[...])                                           # (bt, N*A)

    # q = all_q gathered at argmax(action) per agent (first-max-index, like
    # torch.max); raw actions are a lane-slice of the sa slab.
    q_cols = []
    for i in range(N):
        acts = sa[:, i * idim + sdim:(i + 1) * idim]                    # (bt, A)
        amax = jnp.max(acts, axis=-1, keepdims=True)
        iota = jax.lax.broadcasted_iota(jnp.int32, acts.shape, 1)
        idx = jnp.min(jnp.where(acts >= amax, iota, A), axis=-1, keepdims=True)
        aq_i = all_q[:, i * A:(i + 1) * A]
        q_cols.append(jnp.sum(jnp.where(iota == idx, aq_i, 0.0),
                              axis=-1, keepdims=True))                  # (bt, 1)

    # Single lane-dense output slab: [ all_q (N*A lanes) | q (N lanes) ].
    out_ref[...] = jnp.concatenate([all_q] + q_cols, axis=-1)


def init_params(key, n_agents, sdim, adim, hidden_dim, attend_heads):
    """Deterministic synthetic parameters matching AttentionCritic.__init__ shapes
    (Linear weights stored transposed: (in, out))."""
    D = hidden_dim // attend_heads
    idim = sdim + adim
    ks = jax.random.split(key, 12)

    def w(k, shape, scale=0.1):
        return (scale * jax.random.normal(k, shape)).astype(jnp.float32)

    return dict(
        enc_w=w(ks[0], (n_agents, idim, hidden_dim)),        # critic_encoders.enc_fc1
        enc_b=w(ks[1], (n_agents, 1, hidden_dim)),
        senc_w=w(ks[2], (n_agents, sdim, hidden_dim)),       # state_encoders.s_enc_fc1
        senc_b=w(ks[3], (n_agents, 1, hidden_dim)),
        key_w=w(ks[4], (attend_heads, hidden_dim, D)),       # key_extractors (no bias)
        sel_w=w(ks[5], (attend_heads, hidden_dim, D)),       # selector_extractors (no bias)
        val_w=w(ks[6], (attend_heads, hidden_dim, D)),       # value_extractors
        val_b=w(ks[7], (attend_heads, 1, D)),
        c1_w=w(ks[8], (n_agents, 2 * hidden_dim, hidden_dim)),   # critics.critic_fc1
        c1_b=w(ks[9], (n_agents, 1, hidden_dim)),
        c2_w=w(ks[10], (n_agents, hidden_dim, adim)),        # critics.critic_fc2
        c2_b=w(ks[11], (n_agents, 1, adim)),
    )


@functools.lru_cache(maxsize=1)
def _tpu_budget():
    """(max_batch_tile, vmem_budget_bytes, min_grid_tiles) for this TPU gen."""
    vmem_cap = 64 * 2 ** 20
    try:
        info = pltpu.get_tpu_info()
        vmem_cap = int(getattr(info, "vmem_capacity_bytes", vmem_cap))
    except Exception:
        pass
    if vmem_cap <= 64 * 2 ** 20:
        # v7x-class: 64 MiB VMEM / TC, 2 TensorCores -> prefer >=2 grid tiles.
        return 1024, 40 * 2 ** 20, 2
    # v5e / v6e: 128 MiB VMEM -> large tiles amortize per-grid-step overhead.
    return 2048, 96 * 2 ** 20, 1


def _pick_batch_tile(batch, max_tile, min_tiles=1):
    """Largest multiple-of-8 divisor of `batch` that is <= the cap; whole batch
    if it already fits (or no clean divisor exists)."""
    cap = max_tile
    if min_tiles > 1 and batch // min_tiles >= 8:
        cap = min(cap, (batch // min_tiles) // 8 * 8)
    if batch <= cap:
        return batch
    for bt in range(cap // 8 * 8, 0, -8):
        if batch % bt == 0:
            return bt
    return batch


def attention_critic_forward(params, states, actions):
    max_tile, vmem_budget, min_tiles = _tpu_budget()
    return _attention_critic_forward(params, states, actions,
                                     max_tile, vmem_budget, min_tiles)


@functools.partial(jax.jit, static_argnums=(3, 4, 5))
def _attention_critic_forward(params, states, actions, max_tile, vmem_budget,
                              min_tiles):
    N, B, sdim = states.shape
    adim = actions.shape[-1]
    NH, H, D = params["key_w"].shape
    idim = sdim + adim

    # ---- glue: batch-major slab, agents packed on the lane axis.
    sa = jnp.concatenate([states, actions], axis=-1)              # (N, B, idim)
    sa_slab = jnp.transpose(sa, (1, 0, 2)).reshape(B, N * idim)   # (B, N*idim)

    # ---- training-mode BatchNorm1d(affine=False) folded into the encoder
    # weights/biases (full-batch biased statistics -> batch tiling inside the
    # kernel does not change semantics).
    def bn_stats(x):                                              # (N, B, F)
        mu = jnp.mean(x, axis=1)
        var = jnp.mean((x - mu[:, None, :]) ** 2, axis=1)
        return mu, jax.lax.rsqrt(var + BN_EPS)

    sa_mu, sa_rs = bn_stats(sa)                                   # (N, idim)
    s_mu, s_rs = bn_stats(states)                                 # (N, sdim)

    enc_w_f = params["enc_w"] * sa_rs[:, :, None]                 # (N, idim, H)
    enc_b_f = (params["enc_b"][:, 0, :]
               - jnp.einsum('nf,nfh->nh', sa_mu * sa_rs, params["enc_w"]))
    senc_w_f = params["senc_w"] * s_rs[:, :, None]                # (N, sdim, H)
    senc_b_f = (params["senc_b"][:, 0, :]
                - jnp.einsum('nf,nfh->nh', s_mu * s_rs, params["senc_w"]))
    # zero-pad the state-encoder weight over the action lanes so it consumes
    # the same sa slab (no separate `states` input / DMA).
    senc_w_pad = jnp.concatenate(
        [senc_w_f, jnp.zeros((N, adim, H), senc_w_f.dtype)], axis=1)

    # ---- block-diagonal packing over agents (one wide matmul per layer).
    enc_w_bd = block_diag(*[enc_w_f[i] for i in range(N)])        # (N*idim, N*H)
    senc_w_bd = block_diag(*[senc_w_pad[i] for i in range(N)])    # (N*idim, N*H)
    enc_b_bd = enc_b_f.reshape(1, N * H)
    senc_b_bd = senc_b_f.reshape(1, N * H)

    # shared extractors: heads packed on lanes, replicated per agent.
    key_p = jnp.transpose(params["key_w"], (1, 0, 2)).reshape(H, NH * D)
    sel_p = jnp.transpose(params["sel_w"], (1, 0, 2)).reshape(H, NH * D)
    val_p = jnp.transpose(params["val_w"], (1, 0, 2)).reshape(H, NH * D)
    key_bd = block_diag(*([key_p] * N))                           # (N*H, N*NH*D)
    sel_bd = block_diag(*([sel_p] * N))
    val_bd = block_diag(*([val_p] * N))
    val_b_bd = jnp.tile(params["val_b"].reshape(1, NH * D), (1, N))

    c1a_bd = block_diag(*[params["c1_w"][i][:H, :] for i in range(N)])   # (N*H, N*H)
    c1b_bd = block_diag(*[params["c1_w"][i][H:, :] for i in range(N)])   # (N*H, N*H)
    c1_b_bd = params["c1_b"][:, 0, :].reshape(1, N * H)
    c2_bd = block_diag(*[params["c2_w"][i] for i in range(N)])           # (N*H, N*A)
    c2_b_bd = params["c2_b"][:, 0, :].reshape(1, N * adim)

    weights = (enc_w_bd, enc_b_bd, senc_w_bd, senc_b_bd,
               key_bd, sel_bd, val_bd, val_b_bd,
               c1a_bd, c1b_bd, c1_b_bd, c2_bd, c2_b_bd)
    # matmul weight operands cast once here (bf16 on v6e/v7x); biases stay f32.
    bias_ids = {1, 3, 7, 10, 12}
    weights = tuple(w if i in bias_ids else _mxu(w) for i, w in enumerate(weights))

    bt = _pick_batch_tile(B, max_tile, min_tiles)
    grid = (B // bt,)
    out_width = N * (adim + 1)

    in_specs = ([pl.BlockSpec((bt, N * idim), lambda b: (b, 0))]
                + [pl.BlockSpec(w.shape, lambda b: (0, 0)) for w in weights])
    out_specs = pl.BlockSpec((bt, out_width), lambda b: (b, 0))
    out_shape = jax.ShapeDtypeStruct((B, out_width), jnp.float32)

    # Rough roofline hints for XLA's scheduler around the custom call.
    mm_flops = 2 * B * (2 * (N * idim) * (N * H) + 3 * (N * H) * (N * NH * D)
                        + 2 * (N * H) * (N * H) + (N * H) * (N * adim))
    attn_flops = 4 * B * N * (N - 1) * NH * D
    transcendentals = B * N * (N - 1) * NH
    weight_bytes = sum(int(w.size) * w.dtype.itemsize for w in weights)
    io_bytes = 4 * B * (N * idim + out_width)
    cost = pl.CostEstimate(flops=mm_flops + attn_flops,
                           transcendentals=transcendentals,
                           bytes_accessed=io_bytes + weight_bytes * (B // bt))

    # VMEM budget: (double-buffered) weights + I/O tiles + in-kernel temporaries,
    # capped per-generation (v7x has only 64 MiB/TC).
    tile_bytes = 4 * bt * (N * idim + out_width)
    interm_bytes = 4 * bt * N * (12 * H + 3 * NH * D + 2 * adim)
    vmem_limit = int(min(vmem_budget,
                         max(32 * 2 ** 20,
                             2 * weight_bytes + 2 * tile_bytes + interm_bytes)))

    slab = pl.pallas_call(
        functools.partial(attention_critic_kernel, n_agents=N, sdim=sdim,
                          adim=adim, hidden_dim=H, attend_heads=NH),
        out_shape=out_shape,
        grid=grid,
        in_specs=in_specs,
        out_specs=out_specs,
        compiler_params=pltpu.CompilerParams(
            dimension_semantics=("parallel",),     # batch tiles independent (megacore)
            vmem_limit_bytes=vmem_limit),
        cost_estimate=cost,
    )(sa_slab, *weights)

    all_q = jnp.transpose(slab[:, :N * adim].reshape(B, N, adim), (1, 0, 2))  # (N,B,A)
    q = jnp.transpose(slab[:, N * adim:])[..., None]                          # (N,B,1)
    return q, all_q


def reference_forward(params, states, actions):
    """Pure-JAX transcription of AttentionCritic.forward (hard=False, return_q)."""
    N, B, _ = states.shape
    NH, H, D = params["key_w"].shape

    def bn(x):
        m = x.mean(0, keepdims=True)
        v = ((x - m) ** 2).mean(0, keepdims=True)
        return (x - m) / jnp.sqrt(v + BN_EPS)

    def lrelu(x):
        return jnp.where(x > 0, x, NEG_SLOPE * x)

    sa_encs, s_encs = [], []
    for i in range(N):
        inp = jnp.concatenate([states[i], actions[i]], axis=1)
        sa_encs.append(lrelu(bn(inp) @ params["enc_w"][i] + params["enc_b"][i]))
        s_encs.append(lrelu(bn(states[i]) @ params["senc_w"][i] + params["senc_b"][i]))

    all_keys = [[e @ params["key_w"][h] for e in sa_encs] for h in range(NH)]
    all_vals = [[lrelu(e @ params["val_w"][h] + params["val_b"][h]) for e in sa_encs]
                for h in range(NH)]
    all_sels = [[e @ params["sel_w"][h] for e in s_encs] for h in range(NH)]

    other_all = [[] for _ in range(N)]
    for h in range(NH):
        for i in range(N):
            keys = [k for j, k in enumerate(all_keys[h]) if j != i]
            vals = [v for j, v in enumerate(all_vals[h]) if j != i]
            sel = all_sels[h][i]
            K = jnp.stack(keys).transpose(1, 2, 0)                  # (B, D, N-1)
            logits = jnp.matmul(sel[:, None, :], K)                 # (B, 1, N-1)
            w = jax.nn.softmax(logits / jnp.sqrt(float(D)), axis=2)
            V = jnp.stack(vals).transpose(1, 2, 0)                  # (B, D, N-1)
            other_all[i].append((V * w).sum(axis=2))                # (B, D)

    qs, allqs = [], []
    for i in range(N):
        cin = jnp.concatenate([s_encs[i]] + other_all[i], axis=1)
        h1 = lrelu(cin @ params["c1_w"][i] + params["c1_b"][i])
        all_q = h1 @ params["c2_w"][i] + params["c2_b"][i]
        idx = jnp.argmax(actions[i], axis=1)
        qs.append(jnp.take_along_axis(all_q, idx[:, None], axis=1))
        allqs.append(all_q)
    return jnp.stack(qs), jnp.stack(allqs)


if __name__ == "__main__":
    N_AGENTS, BATCH, SDIM, ADIM, HIDDEN, HEADS = 3, 8, 16, 8, 32, 1

    root = jax.random.PRNGKey(0)
    kp, ks, ka = jax.random.split(root, 3)
    params = init_params(kp, N_AGENTS, SDIM, ADIM, HIDDEN, HEADS)
    states = jax.random.normal(ks, (N_AGENTS, BATCH, SDIM), dtype=jnp.float32)
    actions = jax.random.normal(ka, (N_AGENTS, BATCH, ADIM), dtype=jnp.float32)

    q, all_q = attention_critic_forward(params, states, actions)
    jax.block_until_ready((q, all_q))

    q_ref, allq_ref = reference_forward(params, states, actions)
    assert q.shape == (N_AGENTS, BATCH, 1) and all_q.shape == (N_AGENTS, BATCH, ADIM)
    assert jnp.allclose(q, q_ref, atol=1e-4, rtol=1e-4), "q mismatch vs reference"
    assert jnp.allclose(all_q, allq_ref, atol=1e-4, rtol=1e-4), "all_q mismatch vs reference"

    print("KERNEL_OK")
</pallas_src>

<mosaic_0001>
module attributes {stable_mosaic.version = 11 : i64} {
  func.func @attention_critic_kernel(%arg0: i32, %arg1: memref<8x72xf32, #tpu.memory_space<vmem>>, %arg2: memref<72x96xf32, #tpu.memory_space<vmem>>, %arg3: memref<1x96xf32, #tpu.memory_space<vmem>>, %arg4: memref<72x96xf32, #tpu.memory_space<vmem>>, %arg5: memref<1x96xf32, #tpu.memory_space<vmem>>, %arg6: memref<96x96xf32, #tpu.memory_space<vmem>>, %arg7: memref<96x96xf32, #tpu.memory_space<vmem>>, %arg8: memref<96x96xf32, #tpu.memory_space<vmem>>, %arg9: memref<1x96xf32, #tpu.memory_space<vmem>>, %arg10: memref<96x96xf32, #tpu.memory_space<vmem>>, %arg11: memref<96x96xf32, #tpu.memory_space<vmem>>, %arg12: memref<1x96xf32, #tpu.memory_space<vmem>>, %arg13: memref<96x24xf32, #tpu.memory_space<vmem>>, %arg14: memref<1x24xf32, #tpu.memory_space<vmem>>, %arg15: memref<8x27xf32, #tpu.memory_space<vmem>>) attributes {dimension_semantics = [#tpu.dimension_semantics<parallel>], iteration_bounds = array<i64: 1>, scalar_prefetch = 0 : i64, scratch_operands = 0 : i64, tpu.core_type = #tpu.core_type<tc>, window_params = [{transform_indices = @transform_0, window_bounds = array<i64: 8, 72>}, {pipeline_mode = #tpu.pipeline_mode<synchronous>, transform_indices = @transform_1, window_bounds = array<i64: 72, 96>}, {pipeline_mode = #tpu.pipeline_mode<synchronous>, transform_indices = @transform_2, window_bounds = array<i64: 1, 96>}, {pipeline_mode = #tpu.pipeline_mode<synchronous>, transform_indices = @transform_3, window_bounds = array<i64: 72, 96>}, {pipeline_mode = #tpu.pipeline_mode<synchronous>, transform_indices = @transform_4, window_bounds = array<i64: 1, 96>}, {pipeline_mode = #tpu.pipeline_mode<synchronous>, transform_indices = @transform_5, window_bounds = array<i64: 96, 96>}, {pipeline_mode = #tpu.pipeline_mode<synchronous>, transform_indices = @transform_6, window_bounds = array<i64: 96, 96>}, {pipeline_mode = #tpu.pipeline_mode<synchronous>, transform_indices = @transform_7, window_bounds = array<i64: 96, 96>}, {pipeline_mode = #tpu.pipeline_mode<synchronous>, transform_indices = @transform_8, window_bounds = array<i64: 1, 96>}, {pipeline_mode = #tpu.pipeline_mode<synchronous>, transform_indices = @transform_9, window_bounds = array<i64: 96, 96>}, {pipeline_mode = #tpu.pipeline_mode<synchronous>, transform_indices = @transform_10, window_bounds = array<i64: 96, 96>}, {pipeline_mode = #tpu.pipeline_mode<synchronous>, transform_indices = @transform_11, window_bounds = array<i64: 1, 96>}, {pipeline_mode = #tpu.pipeline_mode<synchronous>, transform_indices = @transform_12, window_bounds = array<i64: 96, 24>}, {pipeline_mode = #tpu.pipeline_mode<synchronous>, transform_indices = @transform_13, window_bounds = array<i64: 1, 24>}, {transform_indices = @transform_14, window_bounds = array<i64: 8, 27>}]} {
    %c0 = arith.constant 0 : index
    %c0_0 = arith.constant 0 : index
    %0 = vector.load %arg1[%c0, %c0_0] : memref<8x72xf32, #tpu.memory_space<vmem>>, vector<8x72xf32>
    %c0_1 = arith.constant 0 : index
    %c0_2 = arith.constant 0 : index
    %1 = vector.load %arg2[%c0_1, %c0_2] : memref<72x96xf32, #tpu.memory_space<vmem>>, vector<72x96xf32>
    %cst = arith.constant dense<0.000000e+00> : vector<8x96xf32>
    %2 = tpu.matmul %0, %1, %cst {dimension_numbers = #tpu.dot_dimension_numbers<[1], [0], [0], [1], [0, 0, 1, 1], [], []>} : vector<8x72xf32>, vector<72x96xf32>, vector<8x96xf32> -> vector<8x96xf32>
    %c0_3 = arith.constant 0 : index
    %c0_4 = arith.constant 0 : index
    %3 = vector.load %arg3[%c0_3, %c0_4] : memref<1x96xf32, #tpu.memory_space<vmem>>, vector<1x96xf32>
    %4 = vector.broadcast %3 : vector<1x96xf32> to vector<8x96xf32>
    %5 = arith.addf %2, %4 : vector<8x96xf32>
    %cst_5 = arith.constant 0.000000e+00 : f32
    %6 = vector.broadcast %cst_5 : f32 to vector<8x96xf32>
    %7 = arith.cmpf ogt, %5, %6 : vector<8x96xf32>
    %cst_6 = arith.constant 0.00999999977 : f32
    %8 = vector.broadcast %cst_6 : f32 to vector<8x96xf32>
    %9 = arith.mulf %8, %5 : vector<8x96xf32>
    %10 = arith.select %7, %5, %9 : vector<8x96xi1>, vector<8x96xf32>
    %c0_7 = arith.constant 0 : index
    %c0_8 = arith.constant 0 : index
    %11 = vector.load %arg4[%c0_7, %c0_8] : memref<72x96xf32, #tpu.memory_space<vmem>>, vector<72x96xf32>
    %cst_9 = arith.constant dense<0.000000e+00> : vector<8x96xf32>
    %12 = tpu.matmul %0, %11, %cst_9 {dimension_numbers = #tpu.dot_dimension_numbers<[1], [0], [0], [1], [0, 0, 1, 1], [], []>} : vector<8x72xf32>, vector<72x96xf32>, vector<8x96xf32> -> vector<8x96xf32>
    %c0_10 = arith.constant 0 : index
    %c0_11 = arith.constant 0 : index
    %13 = vector.load %arg5[%c0_10, %c0_11] : memref<1x96xf32, #tpu.memory_space<vmem>>, vector<1x96xf32>
    %14 = vector.broadcast %13 : vector<1x96xf32> to vector<8x96xf32>
    %15 = arith.addf %12, %14 : vector<8x96xf32>
    %cst_12 = arith.constant 0.000000e+00 : f32
    %16 = vector.broadcast %cst_12 : f32 to vector<8x96xf32>
    %17 = arith.cmpf ogt, %15, %16 : vector<8x96xf32>
    %cst_13 = arith.constant 0.00999999977 : f32
    %18 = vector.broadcast %cst_13 : f32 to vector<8x96xf32>
    %19 = arith.mulf %18, %15 : vector<8x96xf32>
    %20 = arith.select %17, %15, %19 : vector<8x96xi1>, vector<8x96xf32>
    %c0_14 = arith.constant 0 : index
    %c0_15 = arith.constant 0 : index
    %21 = vector.load %arg6[%c0_14, %c0_15] : memref<96x96xf32, #tpu.memory_space<vmem>>, vector<96x96xf32>
    %cst_16 = arith.constant dense<0.000000e+00> : vector<8x96xf32>
    %22 = tpu.matmul %10, %21, %cst_16 {dimension_numbers = #tpu.dot_dimension_numbers<[1], [0], [0], [1], [0, 0, 1, 1], [], []>} : vector<8x96xf32>, vector<96x96xf32>, vector<8x96xf32> -> vector<8x96xf32>
    %c0_17 = arith.constant 0 : index
    %c0_18 = arith.constant 0 : index
    %23 = vector.load %arg7[%c0_17, %c0_18] : memref<96x96xf32, #tpu.memory_space<vmem>>, vector<96x96xf32>
    %cst_19 = arith.constant dense<0.000000e+00> : vector<8x96xf32>
    %24 = tpu.matmul %20, %23, %cst_19 {dimension_numbers = #tpu.dot_dimension_numbers<[1], [0], [0], [1], [0, 0, 1, 1], [], []>} : vector<8x96xf32>, vector<96x96xf32>, vector<8x96xf32> -> vector<8x96xf32>
    %c0_20 = arith.constant 0 : index
    %c0_21 = arith.constant 0 : index
    %25 = vector.load %arg8[%c0_20, %c0_21] : memref<96x96xf32, #tpu.memory_space<vmem>>, vector<96x96xf32>
    %cst_22 = arith.constant dense<0.000000e+00> : vector<8x96xf32>
    %26 = tpu.matmul %10, %25, %cst_22 {dimension_numbers = #tpu.dot_dimension_numbers<[1], [0], [0], [1], [0, 0, 1, 1], [], []>} : vector<8x96xf32>, vector<96x96xf32>, vector<8x96xf32> -> vector<8x96xf32>
    %c0_23 = arith.constant 0 : index
    %c0_24 = arith.constant 0 : index
    %27 = vector.load %arg9[%c0_23, %c0_24] : memref<1x96xf32, #tpu.memory_space<vmem>>, vector<1x96xf32>
    %28 = vector.broadcast %27 : vector<1x96xf32> to vector<8x96xf32>
    %29 = arith.addf %26, %28 : vector<8x96xf32>
    %cst_25 = arith.constant 0.000000e+00 : f32
    %30 = vector.broadcast %cst_25 : f32 to vector<8x96xf32>
    %31 = arith.cmpf ogt, %29, %30 : vector<8x96xf32>
    %cst_26 = arith.constant 0.00999999977 : f32
    %32 = vector.broadcast %cst_26 : f32 to vector<8x96xf32>
    %33 = arith.mulf %32, %29 : vector<8x96xf32>
    %34 = arith.select %31, %29, %33 : vector<8x96xi1>, vector<8x96xf32>
    %35 = vector.extract_strided_slice %24 {offsets = [0, 0], sizes = [8, 32], strides = [1, 1]} : vector<8x96xf32> to vector<8x32xf32>
    %36 = vector.extract_strided_slice %22 {offsets = [0, 32], sizes = [8, 32], strides = [1, 1]} : vector<8x96xf32> to vector<8x32xf32>
    %37 = arith.mulf %35, %36 : vector<8x32xf32>
    %cst_27 = arith.constant dense<0.000000e+00> : vector<8xf32>
    %38 = vector.multi_reduction <add>, %37, %cst_27 [1] : vector<8x32xf32> to vector<8xf32>
    %39 = vector.shape_cast %38 : vector<8xf32> to vector<8x1xf32>
    %40 = vector.extract_strided_slice %22 {offsets = [0, 64], sizes = [8, 32], strides = [1, 1]} : vector<8x96xf32> to vector<8x32xf32>
    %41 = arith.mulf %35, %40 : vector<8x32xf32>
    %cst_28 = arith.constant dense<0.000000e+00> : vector<8xf32>
    %42 = vector.multi_reduction <add>, %41, %cst_28 [1] : vector<8x32xf32> to vector<8xf32>
    %43 = vector.shape_cast %42 : vector<8xf32> to vector<8x1xf32>
    %44 = tpu.concatenate %39, %43 in 1 : vector<8x1xf32>, vector<8x1xf32> -> vector<8x2xf32>
    %cst_29 = arith.constant 0.176776692 : f32
    %45 = vector.broadcast %cst_29 : f32 to vector<8x2xf32>
    %46 = arith.mulf %44, %45 : vector<8x2xf32>
    %cst_30 = arith.constant dense<0xFF800000> : vector<8xf32>
    %47 = vector.multi_reduction <maximumf>, %46, %cst_30 [1] : vector<8x2xf32> to vector<8xf32>
    %48 = vector.shape_cast %47 : vector<8xf32> to vector<8x1xf32>
    %49 = vector.broadcast %48 : vector<8x1xf32> to vector<8x2xf32>
    %50 = arith.subf %46, %49 : vector<8x2xf32>
    %51 = math.exp %50 : vector<8x2xf32>
    %cst_31 = arith.constant dense<0.000000e+00> : vector<8xf32>
    %52 = vector.multi_reduction <add>, %51, %cst_31 [1] : vector<8x2xf32> to vector<8xf32>
    %53 = vector.shape_cast %52 : vector<8xf32> to vector<8x1xf32>
    %54 = tpu.reciprocal %53 : vector<8x1xf32> -> vector<8x1xf32>
    %55 = vector.broadcast %54 : vector<8x1xf32> to vector<8x2xf32>
    %56 = arith.mulf %51, %55 : vector<8x2xf32>
    %57 = vector.extract_strided_slice %34 {offsets = [0, 32], sizes = [8, 32], strides = [1, 1]} : vector<8x96xf32> to vector<8x32xf32>
    %58 = vector.extract_strided_slice %56 {offsets = [0, 0], sizes = [8, 1], strides = [1, 1]} : vector<8x2xf32> to vector<8x1xf32>
    %59 = vector.broadcast %58 : vector<8x1xf32> to vector<8x32xf32>
    %60 = arith.mulf %59, %57 : vector<8x32xf32>
    %61 = vector.extract_strided_slice %34 {offsets = [0, 64], sizes = [8, 32], strides = [1, 1]} : vector<8x96xf32> to vector<8x32xf32>
    %62 = vector.extract_strided_slice %56 {offsets = [0, 1], sizes = [8, 1], strides = [1, 1]} : vector<8x2xf32> to vector<8x1xf32>
    %63 = vector.broadcast %62 : vector<8x1xf32> to vector<8x32xf32>
    %64 = arith.mulf %63, %61 : vector<8x32xf32>
    %65 = arith.addf %60, %64 : vector<8x32xf32>
    %66 = vector.extract_strided_slice %24 {offsets = [0, 32], sizes = [8, 32], strides = [1, 1]} : vector<8x96xf32> to vector<8x32xf32>
    %67 = vector.extract_strided_slice %22 {offsets = [0, 0], sizes = [8, 32], strides = [1, 1]} : vector<8x96xf32> to vector<8x32xf32>
    %68 = arith.mulf %66, %67 : vector<8x32xf32>
    %cst_32 = arith.constant dense<0.000000e+00> : vector<8xf32>
    %69 = vector.multi_reduction <add>, %68, %cst_32 [1] : vector<8x32xf32> to vector<8xf32>
    %70 = vector.shape_cast %69 : vector<8xf32> to vector<8x1xf32>
    %71 = vector.extract_strided_slice %22 {offsets = [0, 64], sizes = [8, 32], strides = [1, 1]} : vector<8x96xf32> to vector<8x32xf32>
    %72 = arith.mulf %66, %71 : vector<8x32xf32>
    %cst_33 = arith.constant dense<0.000000e+00> : vector<8xf32>
    %73 = vector.multi_reduction <add>, %72, %cst_33 [1] : vector<8x32xf32> to vector<8xf32>
    %74 = vector.shape_cast %73 : vector<8xf32> to vector<8x1xf32>
    %75 = tpu.concatenate %70, %74 in 1 : vector<8x1xf32>, vector<8x1xf32> -> vector<8x2xf32>
    %cst_34 = arith.constant 0.176776692 : f32
    %76 = vector.broadcast %cst_34 : f32 to vector<8x2xf32>
    %77 = arith.mulf %75, %76 : vector<8x2xf32>
    %cst_35 = arith.constant dense<0xFF800000> : vector<8xf32>
    %78 = vector.multi_reduction <maximumf>, %77, %cst_35 [1] : vector<8x2xf32> to vector<8xf32>
    %79 = vector.shape_cast %78 : vector<8xf32> to vector<8x1xf32>
    %80 = vector.broadcast %79 : vector<8x1xf32> to vector<8x2xf32>
    %81 = arith.subf %77, %80 : vector<8x2xf32>
    %82 = math.exp %81 : vector<8x2xf32>
    %cst_36 = arith.constant dense<0.000000e+00> : vector<8xf32>
    %83 = vector.multi_reduction <add>, %82, %cst_36 [1] : vector<8x2xf32> to vector<8xf32>
    %84 = vector.shape_cast %83 : vector<8xf32> to vector<8x1xf32>
    %85 = tpu.reciprocal %84 : vector<8x1xf32> -> vector<8x1xf32>
    %86 = vector.broadcast %85 : vector<8x1xf32> to vector<8x2xf32>
    %87 = arith.mulf %82, %86 : vector<8x2xf32>
    %88 = vector.extract_strided_slice %34 {offsets = [0, 0], sizes = [8, 32], strides = [1, 1]} : vector<8x96xf32> to vector<8x32xf32>
    %89 = vector.extract_strided_slice %87 {offsets = [0, 0], sizes = [8, 1], strides = [1, 1]} : vector<8x2xf32> to vector<8x1xf32>
    %90 = vector.broadcast %89 : vector<8x1xf32> to vector<8x32xf32>
    %91 = arith.mulf %90, %88 : vector<8x32xf32>
    %92 = vector.extract_strided_slice %34 {offsets = [0, 64], sizes = [8, 32], strides = [1, 1]} : vector<8x96xf32> to vector<8x32xf32>
    %93 = vector.extract_strided_slice %87 {offsets = [0, 1], sizes = [8, 1], strides = [1, 1]} : vector<8x2xf32> to vector<8x1xf32>
    %94 = vector.broadcast %93 : vector<8x1xf32> to vector<8x32xf32>
    %95 = arith.mulf %94, %92 : vector<8x32xf32>
    %96 = arith.addf %91, %95 : vector<8x32xf32>
    %97 = vector.extract_strided_slice %24 {offsets = [0, 64], sizes = [8, 32], strides = [1, 1]} : vector<8x96xf32> to vector<8x32xf32>
    %98 = vector.extract_strided_slice %22 {offsets = [0, 0], sizes = [8, 32], strides = [1, 1]} : vector<8x96xf32> to vector<8x32xf32>
    %99 = arith.mulf %97, %98 : vector<8x32xf32>
    %cst_37 = arith.constant dense<0.000000e+00> : vector<8xf32>
    %100 = vector.multi_reduction <add>, %99, %cst_37 [1] : vector<8x32xf32> to vector<8xf32>
    %101 = vector.shape_cast %100 : vector<8xf32> to vector<8x1xf32>
    %102 = vector.extract_strided_slice %22 {offsets = [0, 32], sizes = [8, 32], strides = [1, 1]} : vector<8x96xf32> to vector<8x32xf32>
    %103 = arith.mulf %97, %102 : vector<8x32xf32>
    %cst_38 = arith.constant dense<0.000000e+00> : vector<8xf32>
    %104 = vector.multi_reduction <add>, %103, %cst_38 [1] : vector<8x32xf32> to vector<8xf32>
    %105 = vector.shape_cast %104 : vector<8xf32> to vector<8x1xf32>
    %106 = tpu.concatenate %101, %105 in 1 : vector<8x1xf32>, vector<8x1xf32> -> vector<8x2xf32>
    %cst_39 = arith.constant 0.176776692 : f32
    %107 = vector.broadcast %cst_39 : f32 to vector<8x2xf32>
    %108 = arith.mulf %106, %107 : vector<8x2xf32>
    %cst_40 = arith.constant dense<0xFF800000> : vector<8xf32>
    %109 = vector.multi_reduction <maximumf>, %108, %cst_40 [1] : vector<8x2xf32> to vector<8xf32>
    %110 = vector.shape_cast %109 : vector<8xf32> to vector<8x1xf32>
    %111 = vector.broadcast %110 : vector<8x1xf32> to vector<8x2xf32>
    %112 = arith.subf %108, %111 : vector<8x2xf32>
    %113 = math.exp %112 : vector<8x2xf32>
    %cst_41 = arith.constant dense<0.000000e+00> : vector<8xf32>
    %114 = vector.multi_reduction <add>, %113, %cst_41 [1] : vector<8x2xf32> to vector<8xf32>
    %115 = vector.shape_cast %114 : vector<8xf32> to vector<8x1xf32>
    %116 = tpu.reciprocal %115 : vector<8x1xf32> -> vector<8x1xf32>
    %117 = vector.broadcast %116 : vector<8x1xf32> to vector<8x2xf32>
    %118 = arith.mulf %113, %117 : vector<8x2xf32>
    %119 = vector.extract_strided_slice %34 {offsets = [0, 0], sizes = [8, 32], strides = [1, 1]} : vector<8x96xf32> to vector<8x32xf32>
    %120 = vector.extract_strided_slice %118 {offsets = [0, 0], sizes = [8, 1], strides = [1, 1]} : vector<8x2xf32> to vector<8x1xf32>
    %121 = vector.broadcast %120 : vector<8x1xf32> to vector<8x32xf32>
    %122 = arith.mulf %121, %119 : vector<8x32xf32>
    %123 = vector.extract_strided_slice %34 {offsets = [0, 32], sizes = [8, 32], strides = [1, 1]} : vector<8x96xf32> to vector<8x32xf32>
    %124 = vector.extract_strided_slice %118 {offsets = [0, 1], sizes = [8, 1], strides = [1, 1]} : vector<8x2xf32> to vector<8x1xf32>
    %125 = vector.broadcast %124 : vector<8x1xf32> to vector<8x32xf32>
    %126 = arith.mulf %125, %123 : vector<8x32xf32>
    %127 = arith.addf %122, %126 : vector<8x32xf32>
    %128 = tpu.concatenate %65, %96, %127 in 1 : vector<8x32xf32>, vector<8x32xf32>, vector<8x32xf32> -> vector<8x96xf32>
    %c0_42 = arith.constant 0 : index
    %c0_43 = arith.constant 0 : index
    %129 = vector.load %arg10[%c0_42, %c0_43] : memref<96x96xf32, #tpu.memory_space<vmem>>, vector<96x96xf32>
    %cst_44 = arith.constant dense<0.000000e+00> : vector<8x96xf32>
    %130 = tpu.matmul %20, %129, %cst_44 {dimension_numbers = #tpu.dot_dimension_numbers<[1], [0], [0], [1], [0, 0, 1, 1], [], []>} : vector<8x96xf32>, vector<96x96xf32>, vector<8x96xf32> -> vector<8x96xf32>
    %c0_45 = arith.constant 0 : index
    %c0_46 = arith.constant 0 : index
    %131 = vector.load %arg11[%c0_45, %c0_46] : memref<96x96xf32, #tpu.memory_space<vmem>>, vector<96x96xf32>
    %cst_47 = arith.constant dense<0.000000e+00> : vector<8x96xf32>
    %132 = tpu.matmul %128, %131, %cst_47 {dimension_numbers = #tpu.dot_dimension_numbers<[1], [0], [0], [1], [0, 0, 1, 1], [], []>} : vector<8x96xf32>, vector<96x96xf32>, vector<8x96xf32> -> vector<8x96xf32>
    %133 = arith.addf %130, %132 : vector<8x96xf32>
    %c0_48 = arith.constant 0 : index
    %c0_49 = arith.constant 0 : index
    %134 = vector.load %arg12[%c0_48, %c0_49] : memref<1x96xf32, #tpu.memory_space<vmem>>, vector<1x96xf32>
    %135 = vector.broadcast %134 : vector<1x96xf32> to vector<8x96xf32>
    %136 = arith.addf %133, %135 : vector<8x96xf32>
    %cst_50 = arith.constant 0.000000e+00 : f32
    %137 = vector.broadcast %cst_50 : f32 to vector<8x96xf32>
    %138 = arith.cmpf ogt, %136, %137 : vector<8x96xf32>
    %cst_51 = arith.constant 0.00999999977 : f32
    %139 = vector.broadcast %cst_51 : f32 to vector<8x96xf32>
    %140 = arith.mulf %139, %136 : vector<8x96xf32>
    %141 = arith.select %138, %136, %140 : vector<8x96xi1>, vector<8x96xf32>
    %c0_52 = arith.constant 0 : index
    %c0_53 = arith.constant 0 : index
    %142 = vector.load %arg13[%c0_52, %c0_53] : memref<96x24xf32, #tpu.memory_space<vmem>>, vector<96x24xf32>
    %cst_54 = arith.constant dense<0.000000e+00> : vector<8x24xf32>
    %143 = tpu.matmul %141, %142, %cst_54 {dimension_numbers = #tpu.dot_dimension_numbers<[1], [0], [0], [1], [0, 0, 1, 1], [], []>} : vector<8x96xf32>, vector<96x24xf32>, vector<8x24xf32> -> vector<8x24xf32>
    %c0_55 = arith.constant 0 : index
    %c0_56 = arith.constant 0 : index
    %144 = vector.load %arg14[%c0_55, %c0_56] : memref<1x24xf32, #tpu.memory_space<vmem>>, vector<1x24xf32>
    %145 = vector.broadcast %144 : vector<1x24xf32> to vector<8x24xf32>
    %146 = arith.addf %143, %145 : vector<8x24xf32>
    %147 = vector.extract_strided_slice %0 {offsets = [0, 16], sizes = [8, 8], strides = [1, 1]} : vector<8x72xf32> to vector<8x8xf32>
    %cst_57 = arith.constant dense<0xFF800000> : vector<8xf32>
    %148 = vector.multi_reduction <maximumf>, %147, %cst_57 [1] : vector<8x8xf32> to vector<8xf32>
    %149 = vector.shape_cast %148 : vector<8xf32> to vector<8x1xf32>
    %150 = tpu.iota {dimensions = array<i32: 1>} : vector<8x8xi32>
    %151 = vector.broadcast %149 : vector<8x1xf32> to vector<8x8xf32>
    %152 = arith.cmpf oge, %147, %151 : vector<8x8xf32>
    %c8_i32 = arith.constant 8 : i32
    %153 = vector.broadcast %c8_i32 : i32 to vector<8x8xi32>
    %154 = arith.select %152, %150, %153 : vector<8x8xi1>, vector<8x8xi32>
    %cst_58 = arith.constant dense<2147483647> : vector<8xi32>
    %155 = vector.multi_reduction <minsi>, %154, %cst_58 [1] : vector<8x8xi32> to vector<8xi32>
    %156 = vector.shape_cast %155 : vector<8xi32> to vector<8x1xi32>
    %157 = vector.extract_strided_slice %146 {offsets = [0, 0], sizes = [8, 8], strides = [1, 1]} : vector<8x24xf32> to vector<8x8xf32>
    %158 = vector.broadcast %156 : vector<8x1xi32> to vector<8x8xi32>
    %159 = arith.cmpi eq, %150, %158 : vector<8x8xi32>
    %cst_59 = arith.constant 0.000000e+00 : f32
    %160 = vector.broadcast %cst_59 : f32 to vector<8x8xf32>
    %161 = arith.select %159, %157, %160 : vector<8x8xi1>, vector<8x8xf32>
    %cst_60 = arith.constant dense<0.000000e+00> : vector<8xf32>
    %162 = vector.multi_reduction <add>, %161, %cst_60 [1] : vector<8x8xf32> to vector<8xf32>
    %163 = vector.shape_cast %162 : vector<8xf32> to vector<8x1xf32>
    %164 = vector.extract_strided_slice %0 {offsets = [0, 40], sizes = [8, 8], strides = [1, 1]} : vector<8x72xf32> to vector<8x8xf32>
    %cst_61 = arith.constant dense<0xFF800000> : vector<8xf32>
    %165 = vector.multi_reduction <maximumf>, %164, %cst_61 [1] : vector<8x8xf32> to vector<8xf32>
    %166 = vector.shape_cast %165 : vector<8xf32> to vector<8x1xf32>
    %167 = tpu.iota {dimensions = array<i32: 1>} : vector<8x8xi32>
    %168 = vector.broadcast %166 : vector<8x1xf32> to vector<8x8xf32>
    %169 = arith.cmpf oge, %164, %168 : vector<8x8xf32>
    %c8_i32_62 = arith.constant 8 : i32
    %170 = vector.broadcast %c8_i32_62 : i32 to vector<8x8xi32>
    %171 = arith.select %169, %167, %170 : vector<8x8xi1>, vector<8x8xi32>
    %cst_63 = arith.constant dense<2147483647> : vector<8xi32>
    %172 = vector.multi_reduction <minsi>, %171, %cst_63 [1] : vector<8x8xi32> to vector<8xi32>
    %173 = vector.shape_cast %172 : vector<8xi32> to vector<8x1xi32>
    %174 = vector.extract_strided_slice %146 {offsets = [0, 8], sizes = [8, 8], strides = [1, 1]} : vector<8x24xf32> to vector<8x8xf32>
    %175 = vector.broadcast %173 : vector<8x1xi32> to vector<8x8xi32>
    %176 = arith.cmpi eq, %167, %175 : vector<8x8xi32>
    %cst_64 = arith.constant 0.000000e+00 : f32
    %177 = vector.broadcast %cst_64 : f32 to vector<8x8xf32>
    %178 = arith.select %176, %174, %177 : vector<8x8xi1>, vector<8x8xf32>
    %cst_65 = arith.constant dense<0.000000e+00> : vector<8xf32>
    %179 = vector.multi_reduction <add>, %178, %cst_65 [1] : vector<8x8xf32> to vector<8xf32>
    %180 = vector.shape_cast %179 : vector<8xf32> to vector<8x1xf32>
    %181 = vector.extract_strided_slice %0 {offsets = [0, 64], sizes = [8, 8], strides = [1, 1]} : vector<8x72xf32> to vector<8x8xf32>
    %cst_66 = arith.constant dense<0xFF800000> : vector<8xf32>
    %182 = vector.multi_reduction <maximumf>, %181, %cst_66 [1] : vector<8x8xf32> to vector<8xf32>
    %183 = vector.shape_cast %182 : vector<8xf32> to vector<8x1xf32>
    %184 = tpu.iota {dimensions = array<i32: 1>} : vector<8x8xi32>
    %185 = vector.broadcast %183 : vector<8x1xf32> to vector<8x8xf32>
    %186 = arith.cmpf oge, %181, %185 : vector<8x8xf32>
    %c8_i32_67 = arith.constant 8 : i32
    %187 = vector.broadcast %c8_i32_67 : i32 to vector<8x8xi32>
    %188 = arith.select %186, %184, %187 : vector<8x8xi1>, vector<8x8xi32>
    %cst_68 = arith.constant dense<2147483647> : vector<8xi32>
    %189 = vector.multi_reduction <minsi>, %188, %cst_68 [1] : vector<8x8xi32> to vector<8xi32>
    %190 = vector.shape_cast %189 : vector<8xi32> to vector<8x1xi32>
    %191 = vector.extract_strided_slice %146 {offsets = [0, 16], sizes = [8, 8], strides = [1, 1]} : vector<8x24xf32> to vector<8x8xf32>
    %192 = vector.broadcast %190 : vector<8x1xi32> to vector<8x8xi32>
    %193 = arith.cmpi eq, %184, %192 : vector<8x8xi32>
    %cst_69 = arith.constant 0.000000e+00 : f32
    %194 = vector.broadcast %cst_69 : f32 to vector<8x8xf32>
    %195 = arith.select %193, %191, %194 : vector<8x8xi1>, vector<8x8xf32>
    %cst_70 = arith.constant dense<0.000000e+00> : vector<8xf32>
    %196 = vector.multi_reduction <add>, %195, %cst_70 [1] : vector<8x8xf32> to vector<8xf32>
    %197 = vector.shape_cast %196 : vector<8xf32> to vector<8x1xf32>
    %198 = tpu.concatenate %146, %163, %180, %197 in 1 : vector<8x24xf32>, vector<8x1xf32>, vector<8x1xf32>, vector<8x1xf32> -> vector<8x27xf32>
    %c0_71 = arith.constant 0 : index
    %c0_72 = arith.constant 0 : index
    %199 = vector.load %arg15[%c0_71, %c0_72] : memref<8x27xf32, #tpu.memory_space<vmem>>, vector<8x27xf32>
    tpu.vector_store %arg15[%c0_71, %c0_72], %198 {strides = array<i32>} : memref<8x27xf32, #tpu.memory_space<vmem>>, vector<8x27xf32>,
    return
  }
  func.func @transform_0(%arg0: i32) -> (i32, i32) {
    %c0_i32 = arith.constant 0 : i32
    %c0_i32_0 = arith.constant 0 : i32
    return %arg0, %c0_i32 : i32, i32
  }
  func.func @transform_1(%arg0: i32) -> (i32, i32) {
    %c0_i32 = arith.constant 0 : i32
    %c0_i32_0 = arith.constant 0 : i32
    %c0_i32_1 = arith.constant 0 : i32
    return %c0_i32, %c0_i32_0 : i32, i32
  }
  func.func @transform_2(%arg0: i32) -> (i32, i32) {
    %c0_i32 = arith.constant 0 : i32
    %c0_i32_0 = arith.constant 0 : i32
    %c0_i32_1 = arith.constant 0 : i32
    return %c0_i32, %c0_i32_0 : i32, i32
  }
  func.func @transform_3(%arg0: i32) -> (i32, i32) {
    %c0_i32 = arith.constant 0 : i32
    %c0_i32_0 = arith.constant 0 : i32
    %c0_i32_1 = arith.constant 0 : i32
    return %c0_i32, %c0_i32_0 : i32, i32
  }
  func.func @transform_4(%arg0: i32) -> (i32, i32) {
    %c0_i32 = arith.constant 0 : i32
    %c0_i32_0 = arith.constant 0 : i32
    %c0_i32_1 = arith.constant 0 : i32
    return %c0_i32, %c0_i32_0 : i32, i32
  }
  func.func @transform_5(%arg0: i32) -> (i32, i32) {
    %c0_i32 = arith.constant 0 : i32
    %c0_i32_0 = arith.constant 0 : i32
    %c0_i32_1 = arith.constant 0 : i32
    return %c0_i32, %c0_i32_0 : i32, i32
  }
  func.func @transform_6(%arg0: i32) -> (i32, i32) {
    %c0_i32 = arith.constant 0 : i32
    %c0_i32_0 = arith.constant 0 : i32
    %c0_i32_1 = arith.constant 0 : i32
    return %c0_i32, %c0_i32_0 : i32, i32
  }
  func.func @transform_7(%arg0: i32) -> (i32, i32) {
    %c0_i32 = arith.constant 0 : i32
    %c0_i32_0 = arith.constant 0 : i32
    %c0_i32_1 = arith.constant 0 : i32
    return %c0_i32, %c0_i32_0 : i32, i32
  }
  func.func @transform_8(%arg0: i32) -> (i32, i32) {
    %c0_i32 = arith.constant 0 : i32
    %c0_i32_0 = arith.constant 0 : i32
    %c0_i32_1 = arith.constant 0 : i32
    return %c0_i32, %c0_i32_0 : i32, i32
  }
  func.func @transform_9(%arg0: i32) -> (i32, i32) {
    %c0_i32 = arith.constant 0 : i32
    %c0_i32_0 = arith.constant 0 : i32
    %c0_i32_1 = arith.constant 0 : i32
    return %c0_i32, %c0_i32_0 : i32, i32
  }
  func.func @transform_10(%arg0: i32) -> (i32, i32) {
    %c0_i32 = arith.constant 0 : i32
    %c0_i32_0 = arith.constant 0 : i32
    %c0_i32_1 = arith.constant 0 : i32
    return %c0_i32, %c0_i32_0 : i32, i32
  }
  func.func @transform_11(%arg0: i32) -> (i32, i32) {
    %c0_i32 = arith.constant 0 : i32
    %c0_i32_0 = arith.constant 0 : i32
    %c0_i32_1 = arith.constant 0 : i32
    return %c0_i32, %c0_i32_0 : i32, i32
  }
  func.func @transform_12(%arg0: i32) -> (i32, i32) {
    %c0_i32 = arith.constant 0 : i32
    %c0_i32_0 = arith.constant 0 : i32
    %c0_i32_1 = arith.constant 0 : i32
    return %c0_i32, %c0_i32_0 : i32, i32
  }
  func.func @transform_13(%arg0: i32) -> (i32, i32) {
    %c0_i32 = arith.constant 0 : i32
    %c0_i32_0 = arith.constant 0 : i32
    %c0_i32_1 = arith.constant 0 : i32
    return %c0_i32, %c0_i32_0 : i32, i32
  }
  func.func @transform_14(%arg0: i32) -> (i32, i32) {
    %c0_i32 = arith.constant 0 : i32
    %c0_i32_0 = arith.constant 0 : i32
    return %arg0, %c0_i32 : i32, i32
  }
}

</mosaic_0001>

<bundles_post_ra>
// kernel: squeeze.33
= control target key start
LH: loop header
LB: loop body
LE: loop exit
PB: predicated region body
PF: predicated region fallthrough
CT: control target
= control target key end

     0   :  { %vm7_vm0 = vcmask 261120   ;;  %s30_s8 = smov 32   ;;  %vm13_vm1 = vcmask 785920   ;;  %vm19_vm2 = vcmask 523520   ;;  %s47_s0 = inlined_call_operand.vmem [shape: f32[3,32], index: 0, kind: input, shape index: {}]   ;;  %s48_s1 = inlined_call_operand.vmem [shape: f32[1,96], index: 1, kind: output, shape index: {}]  }
   0x1   :  { %v4_v0 = vld [vmem:[%s47_s0] sm:$0xf]  ;;  %s29_s0 = smov 64  }
   0x2   :  { %5 = vst [vmem:[#allocation1] sm:$0xf] %v4_v0 }
   0x9   :  { %v10_v1 = vld [vmem:[#allocation1 + $0x2] sm:$0x1]   ;;  %v6_v2 = vld [vmem:[#allocation1] sm:$0x1]   ;;  %v16_v3 = vld [vmem:[#allocation1 + $0x1] sm:$0x1]  }
   0xa   :  { %11 = vrot.lane.b32.xlu0 %v10_v1, %s29_s0  ;;  %8 = vst.msk [vmem:[#allocation0] sm:$0x1] %vm7_vm0, %v6_v2  }
   0xe   :  { %17 = vrot.lane.b32.xlu0 %v16_v3, %s30_s8 }
  0x7c   :  { %v12_v4 = vpop.permute.xlu0 %11  }
  0x7d   :  { %14 = vst.msk [vmem:[#allocation0] sm:$0x1] %vm13_vm1, %v12_v4  }
  0x80   :  { %v18_v5 = vpop.permute.xlu0 %17  }
  0x81   :  { %20 = vst.msk [vmem:[#allocation0] sm:$0x1] %vm19_vm2, %v18_v5  }
  0x88   :  { %v24_v6 = vld [vmem:[#allocation0] sm:$0x1] }
  0x89   :  { %26 = vst [vmem:[%s48_s1] sm:$0x1] %v24_v6 }

// kernel: squeeze.37
= control target key start
LH: loop header
LB: loop body
LE: loop exit
PB: predicated region body
PF: predicated region fallthrough
CT: control target
= control target key end

     0   :  { %vm7_vm0 = vcmask 64512   ;;  %s30_s8 = smov 8   ;;  %vm13_vm1 = vcmask 195712   ;;  %vm19_vm2 = vcmask 130112   ;;  %s47_s0 = inlined_call_operand.vmem [shape: f32[3,8], index: 0, kind: input, shape index: {}]   ;;  %s48_s1 = inlined_call_operand.vmem [shape: f32[1,24], index: 1, kind: output, shape index: {}]  }
   0x1   :  { %v4_v0 = vld [vmem:[%s47_s0] sm:$0xf]  ;;  %s29_s0 = smov 16  }
   0x2   :  { %5 = vst [vmem:[#allocation1] sm:$0xf] %v4_v0 }
   0x9   :  { %v10_v1 = vld [vmem:[#allocation1 + $0x2] sm:$0x1]   ;;  %v6_v2 = vld [vmem:[#allocation1] sm:$0x1]   ;;  %v16_v3 = vld [vmem:[#allocation1 + $0x1] sm:$0x1]  }
   0xa   :  { %11 = vrot.lane.b32.xlu0 %v10_v1, %s29_s0  ;;  %8 = vst.msk [vmem:[#allocation0] sm:$0x1] %vm7_vm0, %v6_v2  }
   0xe   :  { %17 = vrot.lane.b32.xlu0 %v16_v3, %s30_s8 }
  0x7c   :  { %v12_v4 = vpop.permute.xlu0 %11  }
  0x7d   :  { %14 = vst.msk [vmem:[#allocation0] sm:$0x1] %vm13_vm1, %v12_v4  }
  0x80   :  { %v18_v5 = vpop.permute.xlu0 %17  }
  0x81   :  { %20 = vst.msk [vmem:[#allocation0] sm:$0x1] %vm19_vm2, %v18_v5  }
  0x88   :  { %v24_v6 = vld [vmem:[#allocation0] sm:$0x1] }
  0x89   :  { %26 = vst [vmem:[%s48_s1] sm:$0x1] %v24_v6 }

// kernel: sub.23
= control target key start
LH: loop header
LB: loop body
LE: loop exit
PB: predicated region body
PF: predicated region fallthrough
CT: control target
= control target key end

     0   :  { %s34_s0 = inlined_call_operand.vmem [shape: f32[1,96], index: 0, kind: input, shape index: {}]   ;;  %s35_s1 = inlined_call_operand.vmem [shape: f32[1,96], index: 1, kind: input, shape index: {}]   ;;  %s36_s2 = inlined_call_operand.vmem [shape: f32[1,96], index: 2, kind: output, shape index: {}]  }
   0x1   :  { %v3_v0 = vld [vmem:[%s34_s0] sm:$0x1] }
   0x2   :  { %v4_v1 = vld [vmem:[%s35_s1] sm:$0x1] }
   0x3   :  { %v7_v2 = vsub.f32 %v3_v0, %v4_v1 }
   0x5   :  { %9 = vst [vmem:[%s36_s2] sm:$0x1] %v7_v2 }

// kernel: _attention_critic_forward.1
= control target key start
LH: loop header
LB: loop body
LE: loop exit
PB: predicated region body
PF: predicated region fallthrough
CT: control target
= control target key end

     0   :  { %v1494_v0 = vmov 0.0|0.0   ;;  %vm1495_vm0 = vmmov 0   ;;  %v1496_v4 = vmov 0.0   ;;  %vm64_vm1 = vcmask 588800   ;;  %s1497_s29 = smov 64   ;;  %s1499_s30 = smov 32   ;;  %s2002_s1 = inlined_call_operand.vmem [shape: f32[72,96], index: 1, kind: input, shape index: {}]   ;;  %s2003_s3 = inlined_call_operand.vmem [shape: f32[72,96], index: 3, kind: input, shape index: {}]   ;;  %s2004_s5 = inlined_call_operand.vmem [shape: f32[96,96], index: 5, kind: input, shape index: {}]   ;;  %s2005_s0 = inlined_call_operand.vmem [shape: f32[8,72], index: 0, kind: input, shape index: {}]   ;;  %s2006_s6 = inlined_call_operand.vmem [shape: f32[96,96], index: 6, kind: input, shape index: {}]   ;;  %s2007_s2 = inlined_call_operand.vmem [shape: f32[1,96], index: 2, kind: input, shape index: {}]   ;;  %s2008_s7 = inlined_call_operand.vmem [shape: f32[96,96], index: 7, kind: input, shape index: {}]   ;;  %s2009_s4 = inlined_call_operand.vmem [shape: f32[1,96], index: 4, kind: input, shape index: {}]   ;;  %s2010_s9 = inlined_call_operand.vmem [shape: f32[96,96], index: 9, kind: input, shape index: {}]   ;;  %s2011_s8 = inlined_call_operand.vmem [shape: f32[1,96], index: 8, kind: input, shape index: {}]   ;;  %s2012_s10 = inlined_call_operand.vmem [shape: f32[96,96], index: 10, kind: input, shape index: {}]   ;;  %s2013_s12 = inlined_call_operand.vmem [shape: f32[96,24], index: 12, kind: input, shape index: {}]   ;;  %s2014_s11 = inlined_call_operand.vmem [shape: f32[1,96], index: 11, kind: input, shape index: {}]   ;;  %s2015_s13 = inlined_call_operand.vmem [shape: f32[1,24], index: 13, kind: input, shape index: {}]   ;;  %s2016_s14 = inlined_call_operand.vmem [shape: f32[8,27], index: 14, kind: output, shape index: {}]  }
   0x1   :  { %1335 = vmatprep.subr.bf16.mxu0 %v1494_v0  ;;  %v48_v1 = vld [vmem:[%s2002_s1] sm:$0xff]  ;;  %v49_v2 = vld [vmem:[%s2002_s1 + $0x8] sm:$0xff]  ;;  %v50_v3 = vld [vmem:[%s2002_s1 + $0x10] sm:$0xff]  ;;  %1149 = vmatprep.mubr.msk.f32.mxu0 %vm1495_vm0, %v1496_v4  ;;  %vm242_vm3 = vcmask 785408   ;;  %vm498_vm5 = vcmask 261120   ;;  %vm509_vm6 = vcmask 7168  }
   0x2   :  { %v1336_v5 = vpack.c.bf16 %v49_v2, %v48_v1  ;;  %v51_v6 = vld [vmem:[%s2002_s1 + $0x18] sm:$0xff]  ;;  %1347 = vmatprep.subr.bf16.mxu1 %v1494_v0  ;;  %1170 = vmatprep.mubr.msk.f32.mxu1 %vm1495_vm0, %v1496_v4  ;;  %v52_v8 = vld [vmem:[%s2002_s1 + $0x20] sm:$0xff]  ;;  %v142_v10 = vld [vmem:[%s2003_s3 + $0x8] sm:$0xff]  ;;  %vm512_vm7 = vcmask 15360   ;;  %vm945_vm9 = vcmask 392512   ;;  %vm914_vm10 = vcmask 195712  }
   0x3   :  { %v1339_v7 = vpack.c.bf16 %v51_v6, %v50_v3  ;;  %v141_v9 = vld [vmem:[%s2003_s3] sm:$0xff]  ;;  %v53_v11 = vld [vmem:[%s2002_s1 + $0x28] sm:$0xff]  ;;  %v143_v13 = vld [vmem:[%s2003_s3 + $0x10] sm:$0xff]  ;;  %vm977_vm11 = vcmask 589312   ;;  %vm642_vm12 = vcmask 523264  }
   0x4   :  { %1337 = vmatpush3.bf16.msra.mxu0 %v1336_v5  ;;  %v1348_v12 = vpack.c.bf16 %v142_v10, %v141_v9  ;;  %v144_v14 = vld [vmem:[%s2003_s3 + $0x18] sm:$0xff]  ;;  %v1342_v16 = vpack.c.bf16 %v53_v11, %v52_v8  ;;  %v145_v17 = vld [vmem:[%s2003_s3 + $0x20] sm:$0xff]  ;;  %v146_v18 = vld [vmem:[%s2003_s3 + $0x28] sm:$0xff] }
   0x5   :  { %1338 = vmatprep.subr.bf16.mxu0 %v1494_v0  ;;  %v1351_v15 = vpack.c.bf16 %v144_v14, %v143_v13  ;;  %v54_v19 = vld [vmem:[%s2002_s1 + $0x30] sm:$0xff]  ;;  %v55_v20 = vld [vmem:[%s2002_s1 + $0x38] sm:$0xff]  ;;  %v1354_v21 = vpack.c.bf16 %v146_v18, %v145_v17  ;;  %v230_v26 = vld [vmem:[%s2004_s5] sm:$0xff] }
   0x6   :  { %1349 = vmatpush3.bf16.msra.mxu1 %v1348_v12  ;;  %v1345_v22 = vpack.c.bf16 %v55_v20, %v54_v19  ;;  %v147_v23 = vld [vmem:[%s2003_s3 + $0x30] sm:$0xff]  ;;  %v148_v24 = vld [vmem:[%s2003_s3 + $0x38] sm:$0xff]  ;;  %v231_v27 = vld [vmem:[%s2004_s5 + $0x8] sm:$0xff] }
   0x7   :  { %1350 = vmatprep.subr.bf16.mxu1 %v1494_v0  ;;  %v1357_v25 = vpack.c.bf16 %v148_v24, %v147_v23  ;;  %v56_v28 = vld [vmem:[%s2002_s1 + $0x40] sm:$0xff]  ;;  %v1360_v30 = vpack.c.bf16 %v231_v27, %v230_v26  ;;  %v232_v31 = vld [vmem:[%s2004_s5 + $0x10] sm:$0xff]  ;;  %v233_v32 = vld [vmem:[%s2004_s5 + $0x18] sm:$0xff] }
   0x8   :  { %1340 = vmatpush3.bf16.msra.mxu0 %v1339_v7  ;;  %v1654_v29 = vld [vmem:[%s2005_s0] sm:$0xff]  ;;  %v1363_v34 = vpack.c.bf16 %v233_v32, %v232_v31  ;;  %v235_v36 = vld [vmem:[%s2004_s5 + $0x28] sm:$0xff]  ;;  %v236_v38 = vld [vmem:[%s2004_s5 + $0x30] sm:$0xff] }
   0x9   :  { %1341 = vmatprep.subr.bf16.mxu0 %v1494_v0  ;;  %v149_v33 = vld [vmem:[%s2003_s3 + $0x40] sm:$0xff]  ;;  %v237_v39 = vld [vmem:[%s2004_s5 + $0x38] sm:$0xff]  ;;  %v239_v42 = vld [vmem:[%s2004_s5 + $0x48] sm:$0xff] }
   0xa   :  { %1352 = vmatpush3.bf16.msra.mxu1 %v1351_v15  ;;  %v234_v35 = vld [vmem:[%s2004_s5 + $0x20] sm:$0xff]  ;;  %v1369_v40 = vpack.c.bf16 %v237_v39, %v236_v38  ;;  %v240_v44 = vld [vmem:[%s2004_s5 + $0x50] sm:$0xff]  ;;  %v241_v45 = vld [vmem:[%s2004_s5 + $0x58] sm:$0xff] }
   0xb   :  { %1353 = vmatprep.subr.bf16.mxu1 %v1494_v0  ;;  %v1366_v37 = vpack.c.bf16 %v235_v36, %v234_v35  ;;  %v238_v41 = vld [vmem:[%s2004_s5 + $0x40] sm:$0xff]  ;;  %v1375_v46 = vpack.c.bf16 %v241_v45, %v240_v44  ;;  %v317_v48 = vld [vmem:[%s2006_s6 + $0x8] sm:$0xff]  ;;  %v318_v50 = vld [vmem:[%s2006_s6 + $0x10] sm:$0xff] }
   0xc   :  { %1343 = vmatpush3.bf16.msra.mxu0 %v1342_v16  ;;  %v1372_v43 = vpack.c.bf16 %v239_v42, %v238_v41  ;;  %v316_v47 = vld [vmem:[%s2006_s6] sm:$0xff]  ;;  %v319_v51 = vld [vmem:[%s2006_s6 + $0x18] sm:$0xff]  ;;  %v321_v54 = vld [vmem:[%s2006_s6 + $0x28] sm:$0xff] }
   0xd   :  { %1344 = vmatprep.subr.bf16.mxu0 %v1494_v0  ;;  %v1378_v49 = vpack.c.bf16 %v317_v48, %v316_v47  ;;  %v1381_v52 = vpack.c.bf16 %v319_v51, %v318_v50  ;;  %v320_v53 = vld [vmem:[%s2006_s6 + $0x20] sm:$0xff]  ;;  %v322_v56 = vld [vmem:[%s2006_s6 + $0x30] sm:$0xff]  ;;  %v323_v57 = vld [vmem:[%s2006_s6 + $0x38] sm:$0xff] }
   0xe   :  { %1355 = vmatpush3.bf16.msra.mxu1 %v1354_v21  ;;  %v1384_v55 = vpack.c.bf16 %v321_v54, %v320_v53  ;;  %v1387_v58 = vpack.c.bf16 %v323_v57, %v322_v56  ;;  %v324_v59 = vld [vmem:[%s2006_s6 + $0x40] sm:$0xff]  ;;  %v325_v60 = vld [vmem:[%s2006_s6 + $0x48] sm:$0xff]  ;;  %v326_v62 = vld [vmem:[%s2006_s6 + $0x50] sm:$0xff] }
   0xf   :  { %1356 = vmatprep.subr.bf16.mxu1 %v1494_v0  ;;  %v1390_v61 = vpack.c.bf16 %v325_v60, %v324_v59  ;;  %v327_v63 = vld [vmem:[%s2006_s6 + $0x58] sm:$0xff]  ;;  %v1020_v2 = vld [vmem:[%s2007_s2] ss:$0 sm:$0xff]  ;;  %v402_v6 = vld [vmem:[%s2008_s7 + $0x8] sm:$0xff]  ;;  %s1498_s6 = smov 96  }
  0x10   :  { %1346 = vmatpush3.bf16.msra.mxu0 %v1345_v22  ;;  %v1393_v1 = vpack.c.bf16 %v327_v63, %v326_v62  ;;  %v401_v5 = vld [vmem:[%s2008_s7] sm:$0xff]  ;;  %v403_v13 = vld [vmem:[%s2008_s7 + $0x10] sm:$0xff]  ;;  %v404_v14 = vld [vmem:[%s2008_s7 + $0x18] sm:$0xff] }
  0x11   :  { %1147 = vmatprep.subr.mxu0 %v1496_v4  ;;  %v1022_v9 = vld [vmem:[%s2009_s4] ss:$0 sm:$0xff]  ;;  %v1396_v11 = vpack.c.bf16 %v402_v6, %v401_v5  ;;  %v1399_v19 = vpack.c.bf16 %v404_v14, %v403_v13  ;;  %v406_v21 = vld [vmem:[%s2008_s7 + $0x28] sm:$0xff]  ;;  %v407_v24 = vld [vmem:[%s2008_s7 + $0x30] sm:$0xff] }
  0x12   :  { %1358 = vmatpush3.bf16.msra.mxu1 %v1357_v25  ;;  %v405_v20 = vld [vmem:[%s2008_s7 + $0x20] sm:$0xff]  ;;  %v408_v25 = vld [vmem:[%s2008_s7 + $0x38] sm:$0xff]  ;;  %v411_v31 = vld [vmem:[%s2008_s7 + $0x50] sm:$0xff] }
  0x13   :  { %1168 = vmatprep.subr.mxu1 %v1496_v4  ;;  %v1402_v23 = vpack.c.bf16 %v406_v21, %v405_v20  ;;  %v1405_v26 = vpack.c.bf16 %v408_v25, %v407_v24  ;;  %v409_v27 = vld [vmem:[%s2008_s7 + $0x40] sm:$0xff]  ;;  %v412_v32 = vld [vmem:[%s2008_s7 + $0x58] sm:$0xff]  ;;  %v645_v35 = vld [vmem:[%s2010_s9 + $0x8] sm:$0xff] }
  0x14   :  { %1148 = vmatpush3.msra.mxu0 %v56_v28  ;;  %v410_v28 = vld [vmem:[%s2008_s7 + $0x48] sm:$0xff]  ;;  %v647_v38 = vld [vmem:[%s2010_s9 + $0x18] sm:$0xff] }
  0x15   :  { %1150 = vmatmul.mubr.msk.f32.vlgmr.msra.gmra.mrb[0].mxu0 %vm64_vm1, %v1654_v29  ;;  %1359 = vmatprep.subr.bf16.mxu0 %v1494_v0  ;;  %v649_v41 = vld [vmem:[%s2010_s9 + $0x28] sm:$0xff]  ;;  %v651_v44 = vld [vmem:[%s2010_s9 + $0x38] sm:$0xff] }
  0x16   :  { %1361 = vmatpush3.bf16.msra.mxu0 %v1360_v30  ;;  %1197 = vmatprep.mubr.msk.f32.mxu0 %vm1495_vm0, %v1496_v4  ;;  %v1408_v30 = vpack.c.bf16 %v410_v28, %v409_v27  ;;  %v653_v47 = vld [vmem:[%s2010_s9 + $0x48] sm:$0xff]  ;;  %v655_v50 = vld [vmem:[%s2010_s9 + $0x58] sm:$0xff] }
  0x17   :  { %1169 = vmatpush3.msra.mxu1 %v149_v33  ;;  %1362 = vmatprep.subr.bf16.mxu0 %v1494_v0  ;;  %v1411_v33 = vpack.c.bf16 %v412_v32, %v411_v31 }
  0x18   :  { %1171 = vmatmul.mubr.msk.f32.vlgmr.msra.gmra.mrb[0].mxu1 %vm64_vm1, %v1654_v29  ;;  %1377 = vmatprep.subr.bf16.mxu1 %v1494_v0 }
  0x19   :  { %1224 = vmatprep.mubr.msk.f32.mxu1 %vm1495_vm0, %v1496_v4  ;;  %1379 = vmatpush3.bf16.msra.mxu1 %v1378_v49  ;;  %v654_v49 = vld [vmem:[%s2010_s9 + $0x50] sm:$0xff] }
  0x1a   :  { %1364 = vmatpush3.bf16.msra.mxu0 %v1363_v34  ;;  %1380 = vmatprep.subr.bf16.mxu1 %v1494_v0  ;;  %v644_v34 = vld [vmem:[%s2010_s9] sm:$0xff]  ;;  %v1447_v51 = vpack.c.bf16 %v655_v50, %v654_v49 }
  0x1b   :  { %1365 = vmatprep.subr.bf16.mxu0 %v1494_v0  ;;  %v1432_v36 = vpack.c.bf16 %v645_v35, %v644_v34  ;;  %v1500_v35 = vmov 1  }
  0x1c   :  { %1479 = vset.pattern.permute.xlu0 %v1500_v35  ;;  %1480 = vset.pattern.permute.xlu1 %v1500_v35 }
  0x1d   :  { %1382 = vmatpush3.bf16.msra.mxu1 %v1381_v52 }
  0x1e   :  { %1367 = vmatpush3.bf16.msra.mxu0 %v1366_v37  ;;  %1383 = vmatprep.subr.bf16.mxu1 %v1494_v0  ;;  %v646_v37 = vld [vmem:[%s2010_s9 + $0x10] sm:$0xff] }
  0x1f   :  { %1368 = vmatprep.subr.bf16.mxu0 %v1494_v0  ;;  %v1435_v39 = vpack.c.bf16 %v647_v38, %v646_v37 }
  0x21   :  { %1385 = vmatpush3.bf16.msra.mxu1 %v1384_v55 }
  0x22   :  { %1370 = vmatpush3.bf16.msra.mxu0 %v1369_v40  ;;  %1386 = vmatprep.subr.bf16.mxu1 %v1494_v0  ;;  %v648_v40 = vld [vmem:[%s2010_s9 + $0x20] sm:$0xff] }
  0x23   :  { %1371 = vmatprep.subr.bf16.mxu0 %v1494_v0  ;;  %v1438_v42 = vpack.c.bf16 %v649_v41, %v648_v40 }
  0x25   :  { %1388 = vmatpush3.bf16.msra.mxu1 %v1387_v58 }
  0x26   :  { %1373 = vmatpush3.bf16.msra.mxu0 %v1372_v43  ;;  %1389 = vmatprep.subr.bf16.mxu1 %v1494_v0  ;;  %v650_v43 = vld [vmem:[%s2010_s9 + $0x30] sm:$0xff] }
  0x27   :  { %1374 = vmatprep.subr.bf16.mxu0 %v1494_v0  ;;  %v1441_v45 = vpack.c.bf16 %v651_v44, %v650_v43 }
  0x29   :  { %1391 = vmatpush3.bf16.msra.mxu1 %v1390_v61 }
  0x2a   :  { %1376 = vmatpush3.bf16.msra.mxu0 %v1375_v46  ;;  %1392 = vmatprep.subr.bf16.mxu1 %v1494_v0  ;;  %v652_v46 = vld [vmem:[%s2010_s9 + $0x40] sm:$0xff] }
  0x2b   :  { %1395 = vmatprep.subr.bf16.mxu0 %v1494_v0  ;;  %v1444_v48 = vpack.c.bf16 %v653_v47, %v652_v46 }
  0x2d   :  { %1394 = vmatpush3.bf16.msra.mxu1 %v1393_v1 }
  0x2e   :  { %1413 = vmatprep.subr.bf16.mxu1 %v1494_v0 }
  0xe8   :  { %v134_v3 = vpop.f32.mrb[0].mxu0 }
  0xe9   :  { %v135_v7 = vadd.f32 %v1020_v2, %v134_v3  ;;  %v1151_v8 = vpop.f32.mrb[1].mxu0 }
  0xeb   :  { %vm138_vm2 = vcmp.gt.f32.partialorder %v135_v7, 0.0  ;;  %v139_v10 = vmul.f32 0.01, %v135_v7  ;;  %v223_v12 = vpop.f32.mrb[0].mxu1 }
  0xec   :  { %v224_v15 = vadd.f32 %v1022_v9, %v223_v12  ;;  %v1172_v16 = vpop.f32.mrb[1].mxu1 }
  0xed   :  { %v140_v17 = vsel %vm138_vm2, %v135_v7, %v139_v10 }
  0xee   :  { %1198 = vmatmul.mubr.msk.f32.vlgmr.msra.gmra.mrb[2].mxu0 %vm242_vm3, %v140_v17  ;;  %vm227_vm4 = vcmp.gt.f32.partialorder %v224_v15, 0.0  ;;  %v228_v18 = vmul.f32 0.01, %v224_v15 }
  0xef   :  { %1397 = vmatpush3.bf16.msra.mxu0 %v1396_v11  ;;  %1251 = vmatprep.mubr.msk.f32.mxu0 %vm1495_vm0, %v1496_v4 }
  0xf0   :  { %1398 = vmatprep.subr.bf16.mxu0 %v1494_v0  ;;  %v229_v22 = vsel %vm227_vm4, %v224_v15, %v228_v18 }
  0xf1   :  { %1225 = vmatmul.mubr.msk.f32.vlgmr.msra.gmra.mrb[2].mxu1 %vm242_vm3, %v229_v22 }
  0xf2   :  { %1278 = vmatprep.mubr.msk.f32.mxu1 %vm1495_vm0, %v1496_v4 }
  0xf3   :  { %1400 = vmatpush3.bf16.msra.mxu0 %v1399_v19 }
  0xf4   :  { %1401 = vmatprep.subr.bf16.mxu0 %v1494_v0 }
  0xf7   :  { %1403 = vmatpush3.bf16.msra.mxu0 %v1402_v23 }
  0xf8   :  { %1404 = vmatprep.subr.bf16.mxu0 %v1494_v0 }
  0xfb   :  { %1406 = vmatpush3.bf16.msra.mxu0 %v1405_v26 }
  0xfc   :  { %1407 = vmatprep.subr.bf16.mxu0 %v1494_v0 }
  0xff   :  { %1409 = vmatpush3.bf16.msra.mxu0 %v1408_v30 }
 0x100   :  { %1410 = vmatprep.subr.bf16.mxu0 %v1494_v0 }
 0x103   :  { %1412 = vmatpush3.bf16.msra.mxu0 %v1411_v33 }
 0x104   :  { %1431 = vmatprep.subr.bf16.mxu0 %v1494_v0 }
 0x106   :  { %1252 = vmatmul.mubr.msk.f32.vlgmr.msra.gmra.mrb[4].mxu0 %vm242_vm3, %v140_v17 }
 0x107   :  { %1433 = vmatpush3.bf16.msra.mxu0 %v1432_v36  ;;  %1305 = vmatprep.mubr.msk.f32.mxu0 %vm1495_vm0, %v1496_v4 }
 0x108   :  { %1434 = vmatprep.subr.bf16.mxu0 %v1494_v0 }
 0x10b   :  { %1436 = vmatpush3.bf16.msra.mxu0 %v1435_v39 }
 0x10c   :  { %1437 = vmatprep.subr.bf16.mxu0 %v1494_v0 }
 0x10f   :  { %1439 = vmatpush3.bf16.msra.mxu0 %v1438_v42 }
 0x110   :  { %1440 = vmatprep.subr.bf16.mxu0 %v1494_v0 }
 0x113   :  { %1442 = vmatpush3.bf16.msra.mxu0 %v1441_v45 }
 0x114   :  { %1443 = vmatprep.subr.bf16.mxu0 %v1494_v0 }
 0x117   :  { %1445 = vmatpush3.bf16.msra.mxu0 %v1444_v48 }
 0x118   :  { %1446 = vmatprep.subr.bf16.mxu0 %v1494_v0 }
 0x11b   :  { %1448 = vmatpush3.bf16.msra.mxu0 %v1447_v51 }
 0x11e   :  { %1306 = vmatmul.mubr.msk.f32.vlgmr.msra.gmra.mrb[6].mxu0 %vm242_vm3, %v229_v22 }
 0x1c1   :  { %v312_v52 = vpop.f32.mrb[2].mxu0 }
 0x1c2   :  { %502 = vrot.lane.b32.xlu1 %v312_v52, %s1497_s29  ;;  %494 = vrot.lane.b32.xlu0 %v312_v52, %s1498_s6  ;;  %v1199_v53 = vpop.f32.mrb[3].mxu0 }
 0x1c4   :  { %v397_v54 = vpop.f32.mrb[2].mxu1 }
 0x1c5   :  { %v1226_v55 = vpop.f32.mrb[3].mxu1 }
 0x1c6   :  { %540 = vrot.lane.b32.xlu0 %v312_v52, %s1499_s30  ;;  %v1501_v55 = vmov 0  }
 0x1d9   :  { %v1850_v56 = vpop.f32.mrb[4].mxu0 }
 0x1da   :  { %v1253_v57 = vpop.f32.mrb[5].mxu0 }
 0x1db   :  { %v1026_v57 = vld [vmem:[%s2011_s8] ss:$0 sm:$0xff] }
 0x1f1   :  { %v1852_v58 = vpop.f32.mrb[6].mxu0 }
 0x1f2   :  { %v1307_v59 = vpop.f32.mrb[7].mxu0 }
 0x1f3   :  { %v487_v59 = vadd.f32 %v1026_v57, %v1850_v56 }
 0x1f5   :  { %vm490_vm8 = vcmp.gt.f32.partialorder %v487_v59, 0.0 }
 0x234   :  { %v495_v60 = vpop.permute.xlu0 %494  ;;  %v503_v1 = vpop.permute.xlu1 %502 }
 0x235   :  { %v497_v61 = vmul.f32 %v495_v60, %v397_v54  ;;  %v505_v2 = vmul.f32 %v503_v1, %v397_v54  ;;  %v491_v60 = vmul.f32 0.01, %v487_v59 }
 0x237   :  { %552 = vrot.lane.b32.xlu0 %v497_v61, %s1498_s6  ;;  %v506_v3 = vsel %vm498_vm5, %v505_v2, 0.0  ;;  %v499_v5 = vsel %vm498_vm5, %v497_v61, 0.0  ;;  %v492_v61 = vsel %vm490_vm8, %v487_v59, %v491_v60  ;;  %vm1008_vm8 = vcmask 195584  }
 0x238   :  { %v541_v62 = vpop.permute.xlu0 %540 }
 0x239   :  { %v543_v63 = vmul.f32 %v541_v62, %v397_v54 }
 0x23b   :  { %594 = vrot.lane.b32.xlu0 %v543_v63, %s1497_s29  ;;  %545 = vrot.lane.b32.xlu1 %v543_v63, %s1498_s6 }
 0x23f   :  { %588 = vrot.lane.b32.xlu1 %v505_v2, %s1497_s29 }
 0x25a   :  { %507 = vadd.xlane.f32.xlu0 %v506_v3 }
 0x263   :  { %500 = vadd.xlane.f32.xlu1 %v499_v5 }
 0x2a9   :  { %v553_v6 = vpop.permute.xlu0 %552 }
 0x2aa   :  { %v555_v7 = vsel %vm498_vm5, %v553_v6, 0.0 }
 0x2ab   :  { %556 = vadd.xlane.f32.xlu1 %v555_v7 }
 0x2ad   :  { %v546_v8 = vpop.permute.xlu1 %545  ;;  %v595_v9 = vpop.permute.xlu0 %594 }
 0x2ae   :  { %v548_v10 = vsel %vm498_vm5, %v546_v8, 0.0  ;;  %v597_v11 = vsel %vm498_vm5, %v595_v9, 0.0 }
 0x2af   :  { %549 = vadd.xlane.f32.xlu0 %v548_v10  ;;  %598 = vadd.xlane.f32.xlu1 %v597_v11  ;;  %v656_v11 = vld [vmem:[%s2012_s10] sm:$0xff] }
 0x2b1   :  { %v589_v12 = vpop.permute.xlu1 %588 }
 0x2b2   :  { %v591_v13 = vsel %vm498_vm5, %v589_v12, 0.0  ;;  %v657_v12 = vld [vmem:[%s2012_s10 + $0x8] sm:$0xff] }
 0x2b3   :  { %592 = vadd.xlane.f32.xlu0 %v591_v13  ;;  %v658_v13 = vld [vmem:[%s2012_s10 + $0x10] sm:$0xff] }
 0x2e7   :  { %v508_v14 = vpop.xlane.xlu0 %507 }
 0x2f0   :  { %v501_v15 = vpop.xlane.xlu1 %500 }
 0x2f1   :  { %v510_v16 = vsel %vm509_vm6, %v501_v15, %v508_v14  ;;  %v1414_v14 = vpack.c.bf16 %v657_v12, %v656_v11  ;;  %v659_v15 = vld [vmem:[%s2012_s10 + $0x18] sm:$0xff]  ;;  %v832_v12 = vld [vmem:[%s2013_s12 + $0x50] sm:$0xff] }
 0x2f2   :  { %v511_v17 = vmul.f32 0.17677669, %v510_v16  ;;  %v1417_v16 = vpack.c.bf16 %v659_v15, %v658_v13  ;;  %v833_v13 = vld [vmem:[%s2013_s12 + $0x58] sm:$0xff] }
 0x2f3   :  { %1415 = vmatpush3.bf16.msra.mxu1 %v1414_v14  ;;  %v1465_v14 = vpack.c.bf16 %v833_v13, %v832_v12 }
 0x2f4   :  { %v513_v18 = vsel %vm512_vm7, %v511_v17, -inf  ;;  %1416 = vmatprep.subr.bf16.mxu1 %v1494_v0 }
 0x2f5   :  { %514 = vmax.xlane.f32.xlu0 %v513_v18  ;;  %v661_v18 = vld [vmem:[%s2012_s10 + $0x28] sm:$0xff] }
 0x2f7   :  { %1418 = vmatpush3.bf16.msra.mxu1 %v1417_v16 }
 0x2f8   :  { %1419 = vmatprep.subr.bf16.mxu1 %v1494_v0 }
 0x338   :  { %v557_v19 = vpop.xlane.xlu1 %556 }
 0x33c   :  { %v550_v20 = vpop.xlane.xlu0 %549  ;;  %v599_v23 = vpop.xlane.xlu1 %598 }
 0x33d   :  { %v558_v21 = vsel %vm509_vm6, %v550_v20, %v557_v19  ;;  %v662_v20 = vld [vmem:[%s2012_s10 + $0x30] sm:$0xff] }
 0x33e   :  { %v559_v22 = vmul.f32 0.17677669, %v558_v21  ;;  %v663_v21 = vld [vmem:[%s2012_s10 + $0x38] sm:$0xff] }
 0x340   :  { %v593_v24 = vpop.xlane.xlu0 %592  ;;  %v560_v25 = vsel %vm512_vm7, %v559_v22, -inf }
 0x341   :  { %v600_v26 = vsel %vm509_vm6, %v593_v24, %v599_v23  ;;  %561 = vmax.xlane.f32.xlu1 %v560_v25  ;;  %v664_v23 = vld [vmem:[%s2012_s10 + $0x40] sm:$0xff]  ;;  %v665_v24 = vld [vmem:[%s2012_s10 + $0x48] sm:$0xff] }
 0x342   :  { %v601_v27 = vmul.f32 0.17677669, %v600_v26  ;;  %v1426_v25 = vpack.c.bf16 %v665_v24, %v664_v23  ;;  %v666_v26 = vld [vmem:[%s2012_s10 + $0x50] sm:$0xff] }
 0x344   :  { %v602_v28 = vsel %vm512_vm7, %v601_v27, -inf }
 0x345   :  { %603 = vmax.xlane.f32.xlu0 %v602_v28 }
 0x382   :  { %v515_v30 = vpop.xlane.xlu0 %514 }
 0x383   :  { %v516_v31 = vsub.f32 %v511_v17, %v515_v30  ;;  %v660_v17 = vld [vmem:[%s2012_s10 + $0x20] sm:$0xff] }
 0x384   :  { %v1420_v19 = vpack.c.bf16 %v661_v18, %v660_v17 }
 0x385   :  { %v517_v32 = vmul.f32 1.442695, %v516_v31 }
 0x386   :  { %1421 = vmatpush3.bf16.msra.mxu1 %v1420_v19 }
 0x387   :  { %1482 = vpow2.f32 %v517_v32  ;;  %1422 = vmatprep.subr.bf16.mxu1 %v1494_v0 }
 0x391   :  { %v1483_v33 = vpop.eup %1482 }
 0x392   :  { %v519_v34 = vsel %vm512_vm7, %v1483_v33, 0.0 }
 0x393   :  { %520 = vadd.xlane.f32.xlu1 %v519_v34 }
 0x3ce   :  { %v562_v36 = vpop.xlane.xlu1 %561 }
 0x3cf   :  { %v563_v37 = vsub.f32 %v559_v22, %v562_v36  ;;  %v1423_v22 = vpack.c.bf16 %v663_v21, %v662_v20  ;;  %v946_v36 = vsel %vm945_vm9, %v1654_v29, -inf }
 0x3d1   :  { %v564_v38 = vmul.f32 1.442695, %v563_v37  ;;  %1424 = vmatpush3.bf16.msra.mxu1 %v1423_v22  ;;  %v915_v37 = vsel %vm914_vm10, %v1654_v29, -inf  ;;  %v1030_v22 = vld [vmem:[%s2014_s11] ss:$0 sm:$0xff] }
 0x3d2   :  { %v604_v39 = vpop.xlane.xlu0 %603  ;;  %1425 = vmatprep.subr.bf16.mxu1 %v1494_v0 }
 0x3d3   :  { %1484 = vpow2.f32 %v564_v38  ;;  %v605_v40 = vsub.f32 %v601_v27, %v604_v39  ;;  %v667_v27 = vld [vmem:[%s2012_s10 + $0x58] sm:$0xff]  ;;  %v978_v38 = vsel %vm977_vm11, %v1654_v29, -inf  ;;  %v918_v39 = vlaneseq  ;;  %s1502_s10 = smov 16  }
 0x3d4   :  { %v1429_v28 = vpack.c.bf16 %v667_v27, %v666_v26 }
 0x3d5   :  { %v606_v41 = vmul.f32 1.442695, %v605_v40  ;;  %1427 = vmatpush3.bf16.msra.mxu1 %v1426_v25  ;;  %v1928_v40 = vand.u32 127, %v918_v39 }
 0x3d6   :  { %1428 = vmatprep.subr.bf16.mxu1 %v1494_v0 }
 0x3d7   :  { %1486 = vpow2.f32 %v606_v41 }
 0x3d9   :  { %1430 = vmatpush3.bf16.msra.mxu1 %v1429_v28 }
 0x3da   :  { %1449 = vmatprep.subr.bf16.mxu1 %v1494_v0 }
 0x3dd   :  { %v1485_v42 = vpop.eup %1484 }
 0x3de   :  { %v566_v43 = vsel %vm512_vm7, %v1485_v42, 0.0 }
 0x3df   :  { %567 = vadd.xlane.f32.xlu0 %v566_v43  ;;  %v823_v43 = vld [vmem:[%s2013_s12 + $0x8] sm:$0xff] }
 0x3e1   :  { %v1487_v44 = vpop.eup %1486 }
 0x3e2   :  { %v608_v45 = vsel %vm512_vm7, %v1487_v44, 0.0 }
 0x3e3   :  { %609 = vadd.xlane.f32.xlu1 %v608_v45 }
 0x420   :  { %v521_v46 = vpop.xlane.xlu1 %520 }
 0x421   :  { %1488 = vrcp.f32 %v521_v46 }
 0x42b   :  { %v1489_v47 = vpop.eup %1488 }
 0x42c   :  { %v523_v48 = vmul.f32 %v1489_v47, %v1483_v33 }
 0x42e   :  { %531 = vperm.xlu0 %1479, %v523_v48  }
 0x46c   :  { %v568_v49 = vpop.xlane.xlu0 %567 }
 0x46d   :  { %1490 = vrcp.f32 %v568_v49  ;;  %v825_v49 = vld [vmem:[%s2013_s12 + $0x18] sm:$0xff] }
 0x470   :  { %v610_v50 = vpop.xlane.xlu1 %609 }
 0x471   :  { %1492 = vrcp.f32 %v610_v50 }
 0x477   :  { %v1491_v51 = vpop.eup %1490 }
 0x478   :  { %v570_v52 = vmul.f32 %v1491_v51, %v1485_v42  ;;  %v822_v42 = vld [vmem:[%s2013_s12] sm:$0xff] }
 0x479   :  { %v1450_v45 = vpack.c.bf16 %v823_v43, %v822_v42 }
 0x47a   :  { %578 = vperm.xlu1 %1480, %v570_v52  }
 0x47b   :  { %v1493_v53 = vpop.eup %1492 }
 0x47c   :  { %v612_v54 = vmul.f32 %v1493_v53, %v1487_v44  ;;  %v827_v53 = vld [vmem:[%s2013_s12 + $0x28] sm:$0xff] }
 0x47e   :  { %620 = vperm.xlu1 %1480, %v612_v54  }
 0x482   :  { %1481 = vset.pattern.permute.xlu1 %v1501_v55  ;;  %v828_v55 = vld [vmem:[%s2013_s12 + $0x30] sm:$0xff] }
 0x483   :  { %526 = vperm.xlu1 %1481, %v523_v48   ;;  %v824_v48 = vld [vmem:[%s2013_s12 + $0x10] sm:$0xff] }
 0x484   :  { %v1453_v51 = vpack.c.bf16 %v825_v49, %v824_v48 }
 0x487   :  { %573 = vperm.xlu1 %1481, %v570_v52   ;;  %v826_v52 = vld [vmem:[%s2013_s12 + $0x20] sm:$0xff] }
 0x48b   :  { %615 = vperm.xlu1 %1481, %v612_v54   ;;  %v1456_v54 = vpack.c.bf16 %v827_v53, %v826_v52 }
 0x4ad   :  { %v532_v62 = vpop.permute.xlu0 %531 }
 0x4ae   :  { %v534_v63 = vmul.f32 %v532_v62, %v492_v61 }
 0x4b0   :  { %536 = vrot.lane.b32.xlu1 %v534_v63, %s1498_s6 }
 0x4f9   :  { %v579_v1 = vpop.permute.xlu1 %578 }
 0x4fa   :  { %v581_v2 = vmul.f32 %v579_v1, %v492_v61 }
 0x4fc   :  { %583 = vrot.lane.b32.xlu1 %v581_v2, %s1497_s29 }
 0x4fd   :  { %v621_v3 = vpop.permute.xlu1 %620 }
 0x4fe   :  { %v623_v5 = vmul.f32 %v621_v3, %v492_v61 }
 0x500   :  { %625 = vrot.lane.b32.xlu1 %v623_v5, %s1498_s6 }
 0x502   :  { %v527_v6 = vpop.permute.xlu1 %526 }
 0x503   :  { %v529_v9 = vmul.f32 %v527_v6, %v492_v61 }
 0x506   :  { %v574_v7 = vpop.permute.xlu1 %573 }
 0x507   :  { %v576_v30 = vmul.f32 %v574_v7, %v492_v61 }
 0x50a   :  { %v616_v8 = vpop.permute.xlu1 %615 }
 0x50b   :  { %v618_v33 = vmul.f32 %v616_v8, %v492_v61 }
 0x522   :  { %v537_v56 = vpop.permute.xlu1 %536 }
 0x523   :  { %v539_v10 = vadd.f32 %v537_v56, %v529_v9  ;;  %v830_v56 = vld [vmem:[%s2013_s12 + $0x40] sm:$0xff] }
 0x525   :  { %630 = vrot.lane.b32.xlu0 %v539_v10, %s1498_s6  ;;  %v831_v10 = vld [vmem:[%s2013_s12 + $0x48] sm:$0xff] }
 0x526   :  { %v1462_v11 = vpack.c.bf16 %v831_v10, %v830_v56 }
 0x56e   :  { %v584_v31 = vpop.permute.xlu1 %583 }
 0x56f   :  { %v586_v32 = vadd.f32 %v584_v31, %v576_v30 }
 0x571   :  { %634 = vrot.lane.b32.xlu1 %v586_v32, %s1499_s30  ;;  %s1503_s30 = smov 40  }
 0x572   :  { %v626_v34 = vpop.permute.xlu1 %625 }
 0x573   :  { %v628_v35 = vadd.f32 %v626_v34, %v618_v33 }
 0x575   :  { %638 = vrot.lane.b32.xlu0 %v628_v35, %s1497_s29 }
 0x594   :  { %947 = vmax.xlane.f32.xlu0 %v946_v36 }
 0x595   :  { %916 = vmax.xlane.f32.xlu1 %v915_v37 }
 0x597   :  { %v631_v41 = vpop.permute.xlu0 %630 }
 0x598   :  { %979 = vmax.xlane.f32.xlu0 %v978_v38 }
 0x5a6   :  { %921 = vrot.lane.b32.xlu1 %v1928_v40, %s1502_s10 }
 0x5aa   :  { %982 = vrot.lane.b32.xlu1 %v1928_v40, %s1497_s29 }
 0x5ae   :  { %950 = vrot.lane.b32.xlu0 %v1928_v40, %s1503_s30  ;;  %s1504_s30 = smov 120  }
 0x5e3   :  { %v635_v44 = vpop.permute.xlu1 %634 }
 0x5e4   :  { %v641_v46 = vsel %vm498_vm5, %v631_v41, %v635_v44  ;;  %v1031_v44 = vld [vmem:[%s2015_s13] ss:$0 sm:$0xff]  ;;  %s1505_s13 = smov 112  }
 0x5e7   :  { %v639_v47 = vpop.permute.xlu0 %638 }
 0x5e8   :  { %v643_v50 = vsel %vm642_vm12, %v641_v46, %v639_v47 }
 0x5e9   :  { %1279 = vmatmul.mubr.msk.f32.vlgmr.msra.gmra.mrb[4].mxu1 %vm242_vm3, %v643_v50 }
 0x5ea   :  { %1451 = vmatpush3.bf16.msra.mxu1 %v1450_v45  ;;  %1332 = vmatprep.mubr.msk.f32.mxu1 %vm1495_vm0, %v1496_v4  ;;  %v829_v4 = vld [vmem:[%s2013_s12 + $0x38] sm:$0xff] }
 0x5eb   :  { %1452 = vmatprep.subr.bf16.mxu1 %v1494_v0  ;;  %v1459_v57 = vpack.c.bf16 %v829_v4, %v828_v55 }
 0x5ee   :  { %1454 = vmatpush3.bf16.msra.mxu1 %v1453_v51 }
 0x5ef   :  { %1455 = vmatprep.subr.bf16.mxu1 %v1494_v0 }
 0x5f2   :  { %1457 = vmatpush3.bf16.msra.mxu1 %v1456_v54 }
 0x5f3   :  { %1458 = vmatprep.subr.bf16.mxu1 %v1494_v0 }
 0x5f6   :  { %1460 = vmatpush3.bf16.msra.mxu1 %v1459_v57 }
 0x5f7   :  { %1461 = vmatprep.subr.bf16.mxu1 %v1494_v0 }
 0x5fa   :  { %1463 = vmatpush3.bf16.msra.mxu1 %v1462_v11 }
 0x5fb   :  { %1464 = vmatprep.subr.bf16.mxu1 %v1494_v0 }
 0x5fe   :  { %1466 = vmatpush3.bf16.msra.mxu1 %v1465_v14 }
 0x621   :  { %v948_v59 = vpop.xlane.xlu0 %947 }
 0x622   :  { %v917_v60 = vpop.xlane.xlu1 %916  ;;  %vm949_vm14 = vcmp.ge.f32.partialorder %v1654_v29, %v948_v59 }
 0x623   :  { %vm920_vm13 = vcmp.ge.f32.partialorder %v1654_v29, %v917_v60 }
 0x625   :  { %v980_v61 = vpop.xlane.xlu0 %979 }
 0x626   :  { %v922_v62 = vpop.permute.xlu1 %921  ;;  %vm981_vm15 = vcmp.ge.f32.partialorder %v1654_v29, %v980_v61 }
 0x627   :  { %v923_v63 = vsel %vm920_vm13, %v922_v62, 8 }
 0x628   :  { %v924_v1 = vsel %vm914_vm10, %v923_v63, 2147483647  ;;  %vm1012_vm10 = vcmask 211968  }
 0x629   :  { %v951_v2 = vpop.permute.xlu0 %950  ;;  %v926_v3 = vshra.s32 %v924_v1, 16  ;;  %v925_v15 = vand.u32 65535, %v924_v1 }
 0x62a   :  { %v952_v5 = vsel %vm949_vm14, %v951_v2, 8  ;;  %v983_v16 = vpop.permute.xlu1 %982 }
 0x62b   :  { %v953_v6 = vsel %vm945_vm9, %v952_v5, 2147483647  ;;  %v928_v7 = vcvt.s32.f32 %v926_v3  ;;  %v984_v17 = vsel %vm981_vm15, %v983_v16, 8  ;;  %v927_v19 = vcvt.s32.f32 %v925_v15 }
 0x62c   :  { %v955_v8 = vshra.s32 %v953_v6, 16  ;;  %v954_v18 = vand.u32 65535, %v953_v6  ;;  %v985_v20 = vsel %vm977_vm11, %v984_v17, 2147483647  ;;  %vm1010_vm9 = vcmask 203776  }
 0x62d   :  { %929 = vmin.xlane.f32.xlu1 %v928_v7  ;;  %v987_v29 = vshra.s32 %v985_v20, 16  ;;  %v986_v38 = vand.u32 65535, %v985_v20  ;;  %vm1014_vm11 = vcmask 220160  }
 0x62e   :  { %v957_v9 = vcvt.s32.f32 %v955_v8  ;;  %v956_v24 = vcvt.s32.f32 %v954_v18 }
 0x62f   :  { %v989_v32 = vcvt.s32.f32 %v987_v29  ;;  %v988_v42 = vcvt.s32.f32 %v986_v38 }
 0x631   :  { %958 = vmin.xlane.f32.xlu1 %v957_v9 }
 0x6ba   :  { %v930_v0 = vpop.xlane.xlu1 %929 }
 0x6bb   :  { %vm931_vm0 = vcmp.eq.f32.partialorder %v928_v7, %v930_v0  ;;  %v936_v34 = vcvt.f32.s32 %v930_v0 }
 0x6bc   :  { %v737_v21 = vpop.f32.mrb[4].mxu1  ;;  %v932_v23 = vsel %vm931_vm0, %v927_v19, inf }
 0x6bd   :  { %v808_v25 = vadd.f32 %v1852_v58, %v737_v21  ;;  %933 = vmin.xlane.f32.xlu0 %v932_v23  ;;  %v1280_v26 = vpop.f32.mrb[5].mxu1  ;;  %v937_v35 = vshll.u32 %v936_v34, 16 }
 0x6be   :  { %v959_v27 = vpop.xlane.xlu1 %958 }
 0x6bf   :  { %v818_v28 = vadd.f32 %v1030_v22, %v808_v25  ;;  %vm960_vm1 = vcmp.eq.f32.partialorder %v957_v9, %v959_v27  ;;  %v965_v50 = vcvt.f32.s32 %v959_v27 }
 0x6c0   :  { %v961_v30 = vsel %vm960_vm1, %v956_v24, inf }
 0x6c1   :  { %vm819_vm2 = vcmp.gt.f32.partialorder %v818_v28, 0.0  ;;  %v820_v31 = vmul.f32 0.01, %v818_v28  ;;  %962 = vmin.xlane.f32.xlu0 %v961_v30  ;;  %v966_v51 = vshll.u32 %v965_v50, 16 }
 0x6c3   :  { %v821_v33 = vsel %vm819_vm2, %v818_v28, %v820_v31 }
 0x6c4   :  { %1333 = vmatmul.mubr.msk.f32.vlgmr.msra.gmra.mrb[6].mxu1 %vm242_vm3, %v821_v33  ;;  %vm941_vm3 = vcmask 64512  }
 0x6c5   :  { %990 = vmin.xlane.f32.xlu0 %v989_v32 }
 0x74a   :  { %v934_v36 = vpop.xlane.xlu0 %933 }
 0x74b   :  { %v935_v37 = vcvt.f32.s32 %v934_v36 }
 0x74d   :  { %v938_v58 = vadd.s32 %v937_v35, %v935_v37 }
 0x74e   :  { %v963_v39 = vpop.xlane.xlu0 %962 }
 0x74f   :  { %vm939_vm5 = vcmp.eq.s32.totalorder %v1928_v40, %v938_v58  ;;  %v964_v52 = vcvt.f32.s32 %v963_v39 }
 0x751   :  { %v967_v53 = vadd.s32 %v966_v51, %v964_v52 }
 0x752   :  { %v991_v41 = vpop.xlane.xlu0 %990 }
 0x753   :  { %vm992_vm4 = vcmp.eq.f32.partialorder %v989_v32, %v991_v41  ;;  %vm968_vm6 = vcmp.eq.s32.totalorder %v1928_v40, %v967_v53  ;;  %v997_v59 = vcvt.f32.s32 %v991_v41 }
 0x754   :  { %v993_v43 = vsel %vm992_vm4, %v988_v42, inf }
 0x755   :  { %994 = vmin.xlane.f32.xlu0 %v993_v43  ;;  %v998_v62 = vshll.u32 %v997_v59, 16 }
 0x797   :  { %v910_v45 = vpop.f32.mrb[6].mxu1 }
 0x798   :  { %v911_v46 = vadd.f32 %v1031_v44, %v910_v45  ;;  %v1334_v47 = vpop.f32.mrb[7].mxu1 }
 0x79a   :  { %970 = vrot.lane.b32.xlu1 %v911_v46, %s1504_s30  ;;  %v940_v48 = vsel %vm939_vm5, %v911_v46, 0.0 }
 0x79b   :  { %v942_v49 = vsel %vm941_vm3, %v940_v48, 0.0 }
 0x79c   :  { %943 = vadd.xlane.f32.xlu0 %v942_v49 }
 0x7e2   :  { %v995_v57 = vpop.xlane.xlu0 %994 }
 0x7e3   :  { %v996_v60 = vcvt.f32.s32 %v995_v57 }
 0x7e5   :  { %v999_v63 = vadd.s32 %v998_v62, %v996_v60 }
 0x7e7   :  { %vm1000_vm7 = vcmp.eq.s32.totalorder %v1928_v40, %v999_v63 }
 0x80c   :  { %v971_v54 = vpop.permute.xlu1 %970 }
 0x80d   :  { %v973_v55 = vsel %vm968_vm6, %v971_v54, 0.0 }
 0x80e   :  { %v974_v4 = vsel %vm941_vm3, %v973_v55, 0.0 }
 0x80f   :  { %975 = vadd.xlane.f32.xlu0 %v974_v4 }
 0x825   :  { %1001 = vrot.lane.b32.xlu0 %v911_v46, %s1505_s13 }
 0x829   :  { %v944_v61 = vpop.xlane.xlu0 %943 }
 0x82a   :  { %v1009_v6 = vsel %vm1008_vm8, %v911_v46, %v944_v61 }
 0x89c   :  { %v976_v1 = vpop.xlane.xlu0 %975 }
 0x89d   :  { %v1011_v7 = vsel %vm1010_vm9, %v1009_v6, %v976_v1 }
 0x8a0   :  { %v1002_v2 = vpop.permute.xlu0 %1001 }
 0x8a1   :  { %v1004_v3 = vsel %vm1000_vm7, %v1002_v2, 0.0 }
 0x8a2   :  { %v1005_v5 = vsel %vm941_vm3, %v1004_v3, 0.0 }
 0x8a3   :  { %1006 = vadd.xlane.f32.xlu1 %v1005_v5 }
 0x930   :  { %v1007_v8 = vpop.xlane.xlu1 %1006 }
 0x931   :  { %v1013_v9 = vsel %vm1012_vm10, %v1011_v7, %v1007_v8 }
 0x932   :  { %1015 = vst.msk [vmem:[%s2016_s14] sm:$0xff] %vm1014_vm11, %v1013_v9 }

</bundles_post_ra>
